<compile_context>
chip_gen: v5e
topology: v5e:2x2
jax: 0.10.0
libtpu: 0.0.40
codegen_flags: <defaults>
</compile_context>

<pallas_src>
import jax
import jax.numpy as jnp
from jax.experimental import pallas as pl
from jax.experimental.pallas import tpu as pltpu

INPUT_SIZE = 300
K_PAD = 384          # 300 zero-padded up to a lane multiple (3 * 128)
HIDDEN_SIZE = 32
SEQ_LEN = 8
BATCH = 2


def _lstm_seq_kernel(x_ref, h0_ref, c0_ref, wih_ref, whh_ref, b_ref,
                     h_seq_ref, c_out_ref, xpad_ref):
    """One grid step = one full LSTM sequence (all T timesteps).

    x_ref     : (T, 300)    f32   raw (unpadded) inputs for this sequence
    h0/c0     : (1, H)      f32   initial hidden / cell state
    wih_ref   : (K_PAD, 4H) bf16  transposed, K-padded weight_ih
    whh_ref   : (H, 4H)     f32   transposed weight_hh (recurrence stays f32)
    b_ref     : (1, 4H)     f32   b_ih + b_hh
    h_seq_ref : (T, H)      f32   all hidden states (== LSTM `output`)
    c_out_ref : (1, H)      f32   final cell state
    xpad_ref  : (T, K_PAD)  f32   scratch: in-kernel K zero-pad of x
    """
    H = h0_ref.shape[-1]
    T = h_seq_ref.shape[0]

    # In-kernel zero-pad of K (300 -> 384).  Weight rows 300..383 are zero, so
    # the contraction is exact; no wrapper-side pad dispatch is needed.
    xpad_ref[...] = jnp.zeros_like(xpad_ref)
    xpad_ref[:, :INPUT_SIZE] = x_ref[...]

    # Hoisted input projection: one MXU matmul with M = T rows, bf16 operands,
    # f32 accumulation.  gx is exactly one f32 vreg at (8, 128) -> keep it
    # register-resident (no VMEM scratch, no store->load on the critical path).
    gx = jnp.dot(xpad_ref[...].astype(jnp.bfloat16), wih_ref[...],
                 preferred_element_type=jnp.float32) + b_ref[...]

    whh = whh_ref[...]     # (H, 4H) f32, stays in vregs across the loop
    h = h0_ref[...]        # (1, H) f32
    c = c0_ref[...]        # (1, H) f32

    hs = []
    for t in range(T):     # static unroll; T is small and known at trace time
        gates = gx[t:t + 1, :] + jnp.dot(h, whh,
                                         preferred_element_type=jnp.float32)
        # Two full-vreg EUP ops (sigmoid/tanh on all 4H lanes), slice after.
        sig = jax.nn.sigmoid(gates)
        tnh = jnp.tanh(gates)
        i_g = sig[:, 0 * H:1 * H]
        f_g = sig[:, 1 * H:2 * H]
        g_g = tnh[:, 2 * H:3 * H]
        o_g = sig[:, 3 * H:4 * H]
        c = f_g * c + i_g * g_g
        h = o_g * jnp.tanh(c)
        hs.append(h)

    # One dense (T, H) slab store instead of T per-step masked stores.
    h_seq_ref[...] = jnp.concatenate(hs, axis=0)
    c_out_ref[...] = c


def lstm_batch_pallas(x, h0, c0, wih_t, whh_t, bias):
    """Run B independent LSTM sequences in one pallas_call.

    x    : (B, T, 300) f32
    h0,c0: (B, 1, H)   f32
    wih_t: (K_PAD, 4H) bf16   whh_t: (H, 4H) f32   bias: (1, 4H) f32
    Returns h_seq (B, T, H) f32 and c_n (B, 1, H) f32.
    """
    B, T, _ = x.shape
    H = h0.shape[-1]
    h_seq, c_n = pl.pallas_call(
        _lstm_seq_kernel,
        out_shape=(
            jax.ShapeDtypeStruct((B, T, H), jnp.float32),
            jax.ShapeDtypeStruct((B, 1, H), jnp.float32),
        ),
        grid=(B,),
        in_specs=[
            pl.BlockSpec((None, T, INPUT_SIZE), lambda b: (b, 0, 0)),
            pl.BlockSpec((None, 1, H), lambda b: (b, 0, 0)),
            pl.BlockSpec((None, 1, H), lambda b: (b, 0, 0)),
            # Constant index_maps: weights DMA'd once, resident across the grid.
            pl.BlockSpec((K_PAD, 4 * H), lambda b: (0, 0)),
            pl.BlockSpec((H, 4 * H), lambda b: (0, 0)),
            pl.BlockSpec((1, 4 * H), lambda b: (0, 0)),
        ],
        out_specs=(
            pl.BlockSpec((None, T, H), lambda b: (b, 0, 0)),
            pl.BlockSpec((None, 1, H), lambda b: (b, 0, 0)),
        ),
        scratch_shapes=[pltpu.VMEM((T, K_PAD), jnp.float32)],
        compiler_params=pltpu.CompilerParams(
            dimension_semantics=("parallel",)),
    )(x, h0, c0, wih_t, whh_t, bias)
    return h_seq, c_n


class EncoderPallas:
    """Mirror of the PyTorch Encoder (nn.LSTM(300, hidden_size))."""

    def __init__(self, hidden_size, key):
        self.hidden_size = hidden_size
        k1, k2, k3, k4 = jax.random.split(key, 4)
        bound = 1.0 / jnp.sqrt(hidden_size)  # PyTorch LSTM default init range
        # PyTorch shapes: weight_ih (4H, 300), weight_hh (4H, H), biases (4H,)
        w_ih = jax.random.uniform(k1, (4 * hidden_size, INPUT_SIZE),
                                  jnp.float32, -bound, bound)
        w_hh = jax.random.uniform(k2, (4 * hidden_size, hidden_size),
                                  jnp.float32, -bound, bound)
        b_ih = jax.random.uniform(k3, (4 * hidden_size,), jnp.float32,
                                  -bound, bound)
        b_hh = jax.random.uniform(k4, (4 * hidden_size,), jnp.float32,
                                  -bound, bound)
        # Kernel layouts: wih transposed + K-padded, bf16 (MXU operand, half
        # the weight DMA); whh transposed, kept f32 so the recurrence does not
        # accumulate bf16 rounding error across timesteps.
        wih_t = jnp.zeros((K_PAD, 4 * hidden_size),
                          jnp.float32).at[:INPUT_SIZE].set(w_ih.T)
        self.wih_t = wih_t.astype(jnp.bfloat16)               # (K_PAD, 4H)
        self.whh_t = w_hh.T                                    # (H, 4H) f32
        self.bias = (b_ih + b_hh).reshape(1, 4 * hidden_size)  # (1, 4H) f32

    def init_hidden(self):
        return (jnp.zeros((1, 1, self.hidden_size), jnp.float32),
                jnp.zeros((1, 1, self.hidden_size), jnp.float32))

    def encode_batch(self, x_batch, hidden_state):
        """B sequences, T steps each, in ONE pallas_call (grid=(B,)).

        x_batch: (B, T, 300); hidden_state: (h0, c0) each (1, B, H) (PyTorch
        layout).  Returns output (T, B, H), (h_n (1, B, H), c_n (1, B, H)).
        """
        h0, c0 = hidden_state
        B, T, _ = x_batch.shape
        H = self.hidden_size
        h_seq, c_n = lstm_batch_pallas(
            x_batch.astype(jnp.float32),
            jnp.transpose(h0.reshape(1, B, H), (1, 0, 2)),   # (B, 1, H)
            jnp.transpose(c0.reshape(1, B, H), (1, 0, 2)),   # (B, 1, H)
            self.wih_t, self.whh_t, self.bias)
        output = jnp.transpose(h_seq, (1, 0, 2))             # (T, B, H)
        h_n = output[-1][None]                                # (1, B, H)
        c_n = jnp.transpose(c_n, (1, 0, 2))                   # (1, B, H)
        return output, (h_n, c_n)

    def encode_sequence(self, x_seq, hidden_state):
        """Runs T timesteps (== T chained PyTorch forward() calls) for one
        sequence.  Returns (output (T,1,H), (h_n (1,1,H), c_n (1,1,H)))."""
        h0, c0 = hidden_state
        T = x_seq.shape[0]
        return self.encode_batch(
            x_seq.reshape(1, T, INPUT_SIZE),
            (h0.reshape(1, 1, self.hidden_size),
             c0.reshape(1, 1, self.hidden_size)))

    def forward(self, inp, hidden_state):
        """Matches `self.lstm(inp.view((1, 1, -1)), hidden_state)` (seq_len=1,
        batch=1)."""
        return self.encode_sequence(inp.reshape(1, INPUT_SIZE), hidden_state)


def _reference_batch(enc, x_batch):
    """Pure-JAX reference with the same numeric recipe as the kernel
    (bf16-operand input projection, f32 recurrence), zero initial state.
    Returns output (T, B, H), h_n (1, B, H), c_n (1, B, H)."""
    B, T, _ = x_batch.shape
    H = enc.hidden_size
    xpad = jnp.zeros((B, T, K_PAD), jnp.float32).at[..., :INPUT_SIZE].set(
        x_batch.astype(jnp.float32))
    gx = jnp.einsum("btk,kn->btn", xpad.astype(jnp.bfloat16), enc.wih_t,
                    preferred_element_type=jnp.float32) + enc.bias
    h = jnp.zeros((B, H), jnp.float32)
    c = jnp.zeros((B, H), jnp.float32)
    outs = []
    for t in range(T):
        gates = gx[:, t, :] + jnp.dot(h, enc.whh_t,
                                      preferred_element_type=jnp.float32)
        i = jax.nn.sigmoid(gates[:, 0:H])
        f = jax.nn.sigmoid(gates[:, H:2 * H])
        g = jnp.tanh(gates[:, 2 * H:3 * H])
        o = jax.nn.sigmoid(gates[:, 3 * H:4 * H])
        c = f * c + i * g
        h = o * jnp.tanh(c)
        outs.append(h)
    out = jnp.stack(outs, axis=0)     # (T, B, H)
    return out, h[None], c[None]


if __name__ == "__main__":
    key = jax.random.PRNGKey(0)
    k_params, k_inp = jax.random.split(key)

    enc = EncoderPallas(HIDDEN_SIZE, k_params)
    x_batch = jax.random.normal(k_inp, (BATCH, SEQ_LEN, INPUT_SIZE),
                                jnp.float32)

    # Batched path: B sequences in ONE pallas_call (grid=(B,), weights resident
    # in VMEM, sequences parallel across TensorCores on v7x).
    h0_b = jnp.zeros((1, BATCH, HIDDEN_SIZE), jnp.float32)
    c0_b = jnp.zeros((1, BATCH, HIDDEN_SIZE), jnp.float32)
    output_b, (h_n_b, c_n_b) = enc.encode_batch(x_batch, (h0_b, c0_b))
    jax.block_until_ready((output_b, h_n_b, c_n_b))

    # Single-sequence path (same kernel, B = 1).
    hidden = enc.init_hidden()
    output, (h_n, c_n) = enc.encode_sequence(x_batch[0], hidden)
    jax.block_until_ready((output, h_n, c_n))

    # Single-step path keeps the exact PyTorch forward() signature/semantics.
    out1, (h1, c1) = enc.forward(x_batch[0, 0], hidden)
    jax.block_until_ready((out1, h1, c1))

    # Verify against the pure-JAX reference.
    ref_out, ref_h, ref_c = _reference_batch(enc, x_batch)
    assert output_b.shape == (SEQ_LEN, BATCH, HIDDEN_SIZE)
    assert h_n_b.shape == (1, BATCH, HIDDEN_SIZE)
    assert c_n_b.shape == (1, BATCH, HIDDEN_SIZE)
    assert jnp.allclose(output_b, ref_out, atol=2e-3), "batched output mismatch"
    assert jnp.allclose(h_n_b, ref_h, atol=2e-3), "batched h_n mismatch"
    assert jnp.allclose(c_n_b, ref_c, atol=2e-3), "batched c_n mismatch"
    assert jnp.allclose(output_b[-1], h_n_b[0]), "output[-1] must equal h_n"

    assert output.shape == (SEQ_LEN, 1, HIDDEN_SIZE)
    assert jnp.allclose(output[:, 0], output_b[:, 0], atol=1e-5), \
        "single-sequence path disagrees with batched path"
    assert jnp.allclose(c_n[0, 0], c_n_b[0, 0], atol=1e-5)

    assert out1.shape == (1, 1, HIDDEN_SIZE)
    assert jnp.allclose(out1[0, 0], ref_out[0, 0], atol=2e-3), \
        "single-step mismatch"
    assert jnp.allclose(out1, h1), "seq_len=1: output must equal h_n"

    print("KERNEL_OK")
</pallas_src>

<mosaic_0001>
module attributes {stable_mosaic.version = 11 : i64} {
  func.func @_lstm_seq_kernel(%arg0: i32, %arg1: memref<1x8x300xf32, #tpu.memory_space<vmem>>, %arg2: memref<1x1x32xf32, #tpu.memory_space<vmem>>, %arg3: memref<1x1x32xf32, #tpu.memory_space<vmem>>, %arg4: memref<384x128xbf16, #tpu.memory_space<vmem>>, %arg5: memref<32x128xf32, #tpu.memory_space<vmem>>, %arg6: memref<1x128xf32, #tpu.memory_space<vmem>>, %arg7: memref<1x8x32xf32, #tpu.memory_space<vmem>>, %arg8: memref<1x1x32xf32, #tpu.memory_space<vmem>>, %arg9: memref<8x384xf32, #tpu.memory_space<vmem>>) attributes {dimension_semantics = [#tpu.dimension_semantics<parallel>], iteration_bounds = array<i64: 2>, scalar_prefetch = 0 : i64, scratch_operands = 1 : i64, tpu.core_type = #tpu.core_type<tc>, window_params = [{transform_indices = @transform_0, window_bounds = array<i64: 1, 8, 300>}, {transform_indices = @transform_1, window_bounds = array<i64: 1, 1, 32>}, {transform_indices = @transform_2, window_bounds = array<i64: 1, 1, 32>}, {pipeline_mode = #tpu.pipeline_mode<synchronous>, transform_indices = @transform_3, window_bounds = array<i64: 384, 128>}, {pipeline_mode = #tpu.pipeline_mode<synchronous>, transform_indices = @transform_4, window_bounds = array<i64: 32, 128>}, {pipeline_mode = #tpu.pipeline_mode<synchronous>, transform_indices = @transform_5, window_bounds = array<i64: 1, 128>}, {transform_indices = @transform_6, window_bounds = array<i64: 1, 8, 32>}, {transform_indices = @transform_7, window_bounds = array<i64: 1, 1, 32>}]} {
    %cst = arith.constant 0.000000e+00 : f32
    %0 = vector.broadcast %cst : f32 to vector<8x384xf32>
    %c0 = arith.constant 0 : index
    %c0_0 = arith.constant 0 : index
    %1 = vector.load %arg9[%c0, %c0_0] : memref<8x384xf32, #tpu.memory_space<vmem>>, vector<8x384xf32>
    tpu.vector_store %arg9[%c0, %c0_0], %0 {strides = array<i32>} : memref<8x384xf32, #tpu.memory_space<vmem>>, vector<8x384xf32>,
    %c0_1 = arith.constant 0 : index
    %c0_2 = arith.constant 0 : index
    %c0_3 = arith.constant 0 : index
    %2 = vector.load %arg1[%c0_1, %c0_2, %c0_3] : memref<1x8x300xf32, #tpu.memory_space<vmem>>, vector<1x8x300xf32>
    %3 = vector.shape_cast %2 : vector<1x8x300xf32> to vector<8x300xf32>
    %c0_4 = arith.constant 0 : index
    %c0_5 = arith.constant 0 : index
    %4 = vector.load %arg9[%c0_4, %c0_5] : memref<8x384xf32, #tpu.memory_space<vmem>>, vector<8x300xf32>
    tpu.vector_store %arg9[%c0_4, %c0_5], %3 {strides = array<i32>} : memref<8x384xf32, #tpu.memory_space<vmem>>, vector<8x300xf32>,
    %c0_6 = arith.constant 0 : index
    %c0_7 = arith.constant 0 : index
    %5 = vector.load %arg9[%c0_6, %c0_7] : memref<8x384xf32, #tpu.memory_space<vmem>>, vector<8x384xf32>
    %6 = arith.truncf %5 : vector<8x384xf32> to vector<8x384xbf16>
    %c0_8 = arith.constant 0 : index
    %c0_9 = arith.constant 0 : index
    %7 = vector.load %arg4[%c0_8, %c0_9] : memref<384x128xbf16, #tpu.memory_space<vmem>>, vector<384x128xbf16>
    %cst_10 = arith.constant dense<0.000000e+00> : vector<8x128xf32>
    %8 = tpu.matmul %6, %7, %cst_10 {dimension_numbers = #tpu.dot_dimension_numbers<[1], [0], [0], [1], [0, 0, 1, 1], [], []>} : vector<8x384xbf16>, vector<384x128xbf16>, vector<8x128xf32> -> vector<8x128xf32>
    %c0_11 = arith.constant 0 : index
    %c0_12 = arith.constant 0 : index
    %9 = vector.load %arg6[%c0_11, %c0_12] : memref<1x128xf32, #tpu.memory_space<vmem>>, vector<1x128xf32>
    %10 = vector.broadcast %9 : vector<1x128xf32> to vector<8x128xf32>
    %11 = arith.addf %8, %10 : vector<8x128xf32>
    %c0_13 = arith.constant 0 : index
    %c0_14 = arith.constant 0 : index
    %12 = vector.load %arg5[%c0_13, %c0_14] : memref<32x128xf32, #tpu.memory_space<vmem>>, vector<32x128xf32>
    %c0_15 = arith.constant 0 : index
    %c0_16 = arith.constant 0 : index
    %c0_17 = arith.constant 0 : index
    %13 = vector.load %arg2[%c0_15, %c0_16, %c0_17] : memref<1x1x32xf32, #tpu.memory_space<vmem>>, vector<1x1x32xf32>
    %14 = vector.shape_cast %13 : vector<1x1x32xf32> to vector<1x32xf32>
    %c0_18 = arith.constant 0 : index
    %c0_19 = arith.constant 0 : index
    %c0_20 = arith.constant 0 : index
    %15 = vector.load %arg3[%c0_18, %c0_19, %c0_20] : memref<1x1x32xf32, #tpu.memory_space<vmem>>, vector<1x1x32xf32>
    %16 = vector.shape_cast %15 : vector<1x1x32xf32> to vector<1x32xf32>
    %17 = vector.extract_strided_slice %11 {offsets = [0, 0], sizes = [1, 128], strides = [1, 1]} : vector<8x128xf32> to vector<1x128xf32>
    %cst_21 = arith.constant dense<0.000000e+00> : vector<1x128xf32>
    %18 = tpu.matmul %14, %12, %cst_21 {dimension_numbers = #tpu.dot_dimension_numbers<[1], [0], [0], [1], [0, 0, 1, 1], [], []>} : vector<1x32xf32>, vector<32x128xf32>, vector<1x128xf32> -> vector<1x128xf32>
    %19 = arith.addf %17, %18 : vector<1x128xf32>
    %20 = arith.negf %19 : vector<1x128xf32>
    %21 = math.exp %20 : vector<1x128xf32>
    %cst_22 = arith.constant 1.000000e+00 : f32
    %22 = vector.broadcast %cst_22 : f32 to vector<1x128xf32>
    %23 = arith.addf %22, %21 : vector<1x128xf32>
    %24 = arith.divf %22, %23 : vector<1x128xf32>
    %25 = math.tanh %19 : vector<1x128xf32>
    %26 = vector.extract_strided_slice %24 {offsets = [0, 0], sizes = [1, 32], strides = [1, 1]} : vector<1x128xf32> to vector<1x32xf32>
    %27 = vector.extract_strided_slice %24 {offsets = [0, 32], sizes = [1, 32], strides = [1, 1]} : vector<1x128xf32> to vector<1x32xf32>
    %28 = vector.extract_strided_slice %25 {offsets = [0, 64], sizes = [1, 32], strides = [1, 1]} : vector<1x128xf32> to vector<1x32xf32>
    %29 = vector.extract_strided_slice %24 {offsets = [0, 96], sizes = [1, 32], strides = [1, 1]} : vector<1x128xf32> to vector<1x32xf32>
    %30 = arith.mulf %27, %16 : vector<1x32xf32>
    %31 = arith.mulf %26, %28 : vector<1x32xf32>
    %32 = arith.addf %30, %31 : vector<1x32xf32>
    %33 = math.tanh %32 : vector<1x32xf32>
    %34 = arith.mulf %29, %33 : vector<1x32xf32>
    %35 = vector.extract_strided_slice %11 {offsets = [1, 0], sizes = [1, 128], strides = [1, 1]} : vector<8x128xf32> to vector<1x128xf32>
    %cst_23 = arith.constant dense<0.000000e+00> : vector<1x128xf32>
    %36 = tpu.matmul %34, %12, %cst_23 {dimension_numbers = #tpu.dot_dimension_numbers<[1], [0], [0], [1], [0, 0, 1, 1], [], []>} : vector<1x32xf32>, vector<32x128xf32>, vector<1x128xf32> -> vector<1x128xf32>
    %37 = arith.addf %35, %36 : vector<1x128xf32>
    %38 = arith.negf %37 : vector<1x128xf32>
    %39 = math.exp %38 : vector<1x128xf32>
    %cst_24 = arith.constant 1.000000e+00 : f32
    %40 = vector.broadcast %cst_24 : f32 to vector<1x128xf32>
    %41 = arith.addf %40, %39 : vector<1x128xf32>
    %42 = arith.divf %40, %41 : vector<1x128xf32>
    %43 = math.tanh %37 : vector<1x128xf32>
    %44 = vector.extract_strided_slice %42 {offsets = [0, 0], sizes = [1, 32], strides = [1, 1]} : vector<1x128xf32> to vector<1x32xf32>
    %45 = vector.extract_strided_slice %42 {offsets = [0, 32], sizes = [1, 32], strides = [1, 1]} : vector<1x128xf32> to vector<1x32xf32>
    %46 = vector.extract_strided_slice %43 {offsets = [0, 64], sizes = [1, 32], strides = [1, 1]} : vector<1x128xf32> to vector<1x32xf32>
    %47 = vector.extract_strided_slice %42 {offsets = [0, 96], sizes = [1, 32], strides = [1, 1]} : vector<1x128xf32> to vector<1x32xf32>
    %48 = arith.mulf %45, %32 : vector<1x32xf32>
    %49 = arith.mulf %44, %46 : vector<1x32xf32>
    %50 = arith.addf %48, %49 : vector<1x32xf32>
    %51 = math.tanh %50 : vector<1x32xf32>
    %52 = arith.mulf %47, %51 : vector<1x32xf32>
    %53 = vector.extract_strided_slice %11 {offsets = [2, 0], sizes = [1, 128], strides = [1, 1]} : vector<8x128xf32> to vector<1x128xf32>
    %cst_25 = arith.constant dense<0.000000e+00> : vector<1x128xf32>
    %54 = tpu.matmul %52, %12, %cst_25 {dimension_numbers = #tpu.dot_dimension_numbers<[1], [0], [0], [1], [0, 0, 1, 1], [], []>} : vector<1x32xf32>, vector<32x128xf32>, vector<1x128xf32> -> vector<1x128xf32>
    %55 = arith.addf %53, %54 : vector<1x128xf32>
    %56 = arith.negf %55 : vector<1x128xf32>
    %57 = math.exp %56 : vector<1x128xf32>
    %cst_26 = arith.constant 1.000000e+00 : f32
    %58 = vector.broadcast %cst_26 : f32 to vector<1x128xf32>
    %59 = arith.addf %58, %57 : vector<1x128xf32>
    %60 = arith.divf %58, %59 : vector<1x128xf32>
    %61 = math.tanh %55 : vector<1x128xf32>
    %62 = vector.extract_strided_slice %60 {offsets = [0, 0], sizes = [1, 32], strides = [1, 1]} : vector<1x128xf32> to vector<1x32xf32>
    %63 = vector.extract_strided_slice %60 {offsets = [0, 32], sizes = [1, 32], strides = [1, 1]} : vector<1x128xf32> to vector<1x32xf32>
    %64 = vector.extract_strided_slice %61 {offsets = [0, 64], sizes = [1, 32], strides = [1, 1]} : vector<1x128xf32> to vector<1x32xf32>
    %65 = vector.extract_strided_slice %60 {offsets = [0, 96], sizes = [1, 32], strides = [1, 1]} : vector<1x128xf32> to vector<1x32xf32>
    %66 = arith.mulf %63, %50 : vector<1x32xf32>
    %67 = arith.mulf %62, %64 : vector<1x32xf32>
    %68 = arith.addf %66, %67 : vector<1x32xf32>
    %69 = math.tanh %68 : vector<1x32xf32>
    %70 = arith.mulf %65, %69 : vector<1x32xf32>
    %71 = vector.extract_strided_slice %11 {offsets = [3, 0], sizes = [1, 128], strides = [1, 1]} : vector<8x128xf32> to vector<1x128xf32>
    %cst_27 = arith.constant dense<0.000000e+00> : vector<1x128xf32>
    %72 = tpu.matmul %70, %12, %cst_27 {dimension_numbers = #tpu.dot_dimension_numbers<[1], [0], [0], [1], [0, 0, 1, 1], [], []>} : vector<1x32xf32>, vector<32x128xf32>, vector<1x128xf32> -> vector<1x128xf32>
    %73 = arith.addf %71, %72 : vector<1x128xf32>
    %74 = arith.negf %73 : vector<1x128xf32>
    %75 = math.exp %74 : vector<1x128xf32>
    %cst_28 = arith.constant 1.000000e+00 : f32
    %76 = vector.broadcast %cst_28 : f32 to vector<1x128xf32>
    %77 = arith.addf %76, %75 : vector<1x128xf32>
    %78 = arith.divf %76, %77 : vector<1x128xf32>
    %79 = math.tanh %73 : vector<1x128xf32>
    %80 = vector.extract_strided_slice %78 {offsets = [0, 0], sizes = [1, 32], strides = [1, 1]} : vector<1x128xf32> to vector<1x32xf32>
    %81 = vector.extract_strided_slice %78 {offsets = [0, 32], sizes = [1, 32], strides = [1, 1]} : vector<1x128xf32> to vector<1x32xf32>
    %82 = vector.extract_strided_slice %79 {offsets = [0, 64], sizes = [1, 32], strides = [1, 1]} : vector<1x128xf32> to vector<1x32xf32>
    %83 = vector.extract_strided_slice %78 {offsets = [0, 96], sizes = [1, 32], strides = [1, 1]} : vector<1x128xf32> to vector<1x32xf32>
    %84 = arith.mulf %81, %68 : vector<1x32xf32>
    %85 = arith.mulf %80, %82 : vector<1x32xf32>
    %86 = arith.addf %84, %85 : vector<1x32xf32>
    %87 = math.tanh %86 : vector<1x32xf32>
    %88 = arith.mulf %83, %87 : vector<1x32xf32>
    %89 = vector.extract_strided_slice %11 {offsets = [4, 0], sizes = [1, 128], strides = [1, 1]} : vector<8x128xf32> to vector<1x128xf32>
    %cst_29 = arith.constant dense<0.000000e+00> : vector<1x128xf32>
    %90 = tpu.matmul %88, %12, %cst_29 {dimension_numbers = #tpu.dot_dimension_numbers<[1], [0], [0], [1], [0, 0, 1, 1], [], []>} : vector<1x32xf32>, vector<32x128xf32>, vector<1x128xf32> -> vector<1x128xf32>
    %91 = arith.addf %89, %90 : vector<1x128xf32>
    %92 = arith.negf %91 : vector<1x128xf32>
    %93 = math.exp %92 : vector<1x128xf32>
    %cst_30 = arith.constant 1.000000e+00 : f32
    %94 = vector.broadcast %cst_30 : f32 to vector<1x128xf32>
    %95 = arith.addf %94, %93 : vector<1x128xf32>
    %96 = arith.divf %94, %95 : vector<1x128xf32>
    %97 = math.tanh %91 : vector<1x128xf32>
    %98 = vector.extract_strided_slice %96 {offsets = [0, 0], sizes = [1, 32], strides = [1, 1]} : vector<1x128xf32> to vector<1x32xf32>
    %99 = vector.extract_strided_slice %96 {offsets = [0, 32], sizes = [1, 32], strides = [1, 1]} : vector<1x128xf32> to vector<1x32xf32>
    %100 = vector.extract_strided_slice %97 {offsets = [0, 64], sizes = [1, 32], strides = [1, 1]} : vector<1x128xf32> to vector<1x32xf32>
    %101 = vector.extract_strided_slice %96 {offsets = [0, 96], sizes = [1, 32], strides = [1, 1]} : vector<1x128xf32> to vector<1x32xf32>
    %102 = arith.mulf %99, %86 : vector<1x32xf32>
    %103 = arith.mulf %98, %100 : vector<1x32xf32>
    %104 = arith.addf %102, %103 : vector<1x32xf32>
    %105 = math.tanh %104 : vector<1x32xf32>
    %106 = arith.mulf %101, %105 : vector<1x32xf32>
    %107 = vector.extract_strided_slice %11 {offsets = [5, 0], sizes = [1, 128], strides = [1, 1]} : vector<8x128xf32> to vector<1x128xf32>
    %cst_31 = arith.constant dense<0.000000e+00> : vector<1x128xf32>
    %108 = tpu.matmul %106, %12, %cst_31 {dimension_numbers = #tpu.dot_dimension_numbers<[1], [0], [0], [1], [0, 0, 1, 1], [], []>} : vector<1x32xf32>, vector<32x128xf32>, vector<1x128xf32> -> vector<1x128xf32>
    %109 = arith.addf %107, %108 : vector<1x128xf32>
    %110 = arith.negf %109 : vector<1x128xf32>
    %111 = math.exp %110 : vector<1x128xf32>
    %cst_32 = arith.constant 1.000000e+00 : f32
    %112 = vector.broadcast %cst_32 : f32 to vector<1x128xf32>
    %113 = arith.addf %112, %111 : vector<1x128xf32>
    %114 = arith.divf %112, %113 : vector<1x128xf32>
    %115 = math.tanh %109 : vector<1x128xf32>
    %116 = vector.extract_strided_slice %114 {offsets = [0, 0], sizes = [1, 32], strides = [1, 1]} : vector<1x128xf32> to vector<1x32xf32>
    %117 = vector.extract_strided_slice %114 {offsets = [0, 32], sizes = [1, 32], strides = [1, 1]} : vector<1x128xf32> to vector<1x32xf32>
    %118 = vector.extract_strided_slice %115 {offsets = [0, 64], sizes = [1, 32], strides = [1, 1]} : vector<1x128xf32> to vector<1x32xf32>
    %119 = vector.extract_strided_slice %114 {offsets = [0, 96], sizes = [1, 32], strides = [1, 1]} : vector<1x128xf32> to vector<1x32xf32>
    %120 = arith.mulf %117, %104 : vector<1x32xf32>
    %121 = arith.mulf %116, %118 : vector<1x32xf32>
    %122 = arith.addf %120, %121 : vector<1x32xf32>
    %123 = math.tanh %122 : vector<1x32xf32>
    %124 = arith.mulf %119, %123 : vector<1x32xf32>
    %125 = vector.extract_strided_slice %11 {offsets = [6, 0], sizes = [1, 128], strides = [1, 1]} : vector<8x128xf32> to vector<1x128xf32>
    %cst_33 = arith.constant dense<0.000000e+00> : vector<1x128xf32>
    %126 = tpu.matmul %124, %12, %cst_33 {dimension_numbers = #tpu.dot_dimension_numbers<[1], [0], [0], [1], [0, 0, 1, 1], [], []>} : vector<1x32xf32>, vector<32x128xf32>, vector<1x128xf32> -> vector<1x128xf32>
    %127 = arith.addf %125, %126 : vector<1x128xf32>
    %128 = arith.negf %127 : vector<1x128xf32>
    %129 = math.exp %128 : vector<1x128xf32>
    %cst_34 = arith.constant 1.000000e+00 : f32
    %130 = vector.broadcast %cst_34 : f32 to vector<1x128xf32>
    %131 = arith.addf %130, %129 : vector<1x128xf32>
    %132 = arith.divf %130, %131 : vector<1x128xf32>
    %133 = math.tanh %127 : vector<1x128xf32>
    %134 = vector.extract_strided_slice %132 {offsets = [0, 0], sizes = [1, 32], strides = [1, 1]} : vector<1x128xf32> to vector<1x32xf32>
    %135 = vector.extract_strided_slice %132 {offsets = [0, 32], sizes = [1, 32], strides = [1, 1]} : vector<1x128xf32> to vector<1x32xf32>
    %136 = vector.extract_strided_slice %133 {offsets = [0, 64], sizes = [1, 32], strides = [1, 1]} : vector<1x128xf32> to vector<1x32xf32>
    %137 = vector.extract_strided_slice %132 {offsets = [0, 96], sizes = [1, 32], strides = [1, 1]} : vector<1x128xf32> to vector<1x32xf32>
    %138 = arith.mulf %135, %122 : vector<1x32xf32>
    %139 = arith.mulf %134, %136 : vector<1x32xf32>
    %140 = arith.addf %138, %139 : vector<1x32xf32>
    %141 = math.tanh %140 : vector<1x32xf32>
    %142 = arith.mulf %137, %141 : vector<1x32xf32>
    %143 = vector.extract_strided_slice %11 {offsets = [7, 0], sizes = [1, 128], strides = [1, 1]} : vector<8x128xf32> to vector<1x128xf32>
    %cst_35 = arith.constant dense<0.000000e+00> : vector<1x128xf32>
    %144 = tpu.matmul %142, %12, %cst_35 {dimension_numbers = #tpu.dot_dimension_numbers<[1], [0], [0], [1], [0, 0, 1, 1], [], []>} : vector<1x32xf32>, vector<32x128xf32>, vector<1x128xf32> -> vector<1x128xf32>
    %145 = arith.addf %143, %144 : vector<1x128xf32>
    %146 = arith.negf %145 : vector<1x128xf32>
    %147 = math.exp %146 : vector<1x128xf32>
    %cst_36 = arith.constant 1.000000e+00 : f32
    %148 = vector.broadcast %cst_36 : f32 to vector<1x128xf32>
    %149 = arith.addf %148, %147 : vector<1x128xf32>
    %150 = arith.divf %148, %149 : vector<1x128xf32>
    %151 = math.tanh %145 : vector<1x128xf32>
    %152 = vector.extract_strided_slice %150 {offsets = [0, 0], sizes = [1, 32], strides = [1, 1]} : vector<1x128xf32> to vector<1x32xf32>
    %153 = vector.extract_strided_slice %150 {offsets = [0, 32], sizes = [1, 32], strides = [1, 1]} : vector<1x128xf32> to vector<1x32xf32>
    %154 = vector.extract_strided_slice %151 {offsets = [0, 64], sizes = [1, 32], strides = [1, 1]} : vector<1x128xf32> to vector<1x32xf32>
    %155 = vector.extract_strided_slice %150 {offsets = [0, 96], sizes = [1, 32], strides = [1, 1]} : vector<1x128xf32> to vector<1x32xf32>
    %156 = arith.mulf %153, %140 : vector<1x32xf32>
    %157 = arith.mulf %152, %154 : vector<1x32xf32>
    %158 = arith.addf %156, %157 : vector<1x32xf32>
    %159 = math.tanh %158 : vector<1x32xf32>
    %160 = arith.mulf %155, %159 : vector<1x32xf32>
    %161 = tpu.concatenate %34, %52, %70, %88, %106, %124, %142, %160 in 0 : vector<1x32xf32>, vector<1x32xf32>, vector<1x32xf32>, vector<1x32xf32>, vector<1x32xf32>, vector<1x32xf32>, vector<1x32xf32>, vector<1x32xf32> -> vector<8x32xf32>
    %c0_37 = arith.constant 0 : index
    %c0_38 = arith.constant 0 : index
    %c0_39 = arith.constant 0 : index
    %162 = vector.load %arg7[%c0_37, %c0_38, %c0_39] : memref<1x8x32xf32, #tpu.memory_space<vmem>>, vector<1x8x32xf32>
    %163 = vector.shape_cast %162 : vector<1x8x32xf32> to vector<8x32xf32>
    %164 = vector.shape_cast %161 : vector<8x32xf32> to vector<1x8x32xf32>
    tpu.vector_store %arg7[%c0_37, %c0_38, %c0_39], %164 {strides = array<i32>} : memref<1x8x32xf32, #tpu.memory_space<vmem>>, vector<1x8x32xf32>,
    %c0_40 = arith.constant 0 : index
    %c0_41 = arith.constant 0 : index
    %c0_42 = arith.constant 0 : index
    %165 = vector.load %arg8[%c0_40, %c0_41, %c0_42] : memref<1x1x32xf32, #tpu.memory_space<vmem>>, vector<1x1x32xf32>
    %166 = vector.shape_cast %165 : vector<1x1x32xf32> to vector<1x32xf32>
    %167 = vector.shape_cast %158 : vector<1x32xf32> to vector<1x1x32xf32>
    tpu.vector_store %arg8[%c0_40, %c0_41, %c0_42], %167 {strides = array<i32>} : memref<1x1x32xf32, #tpu.memory_space<vmem>>, vector<1x1x32xf32>,
    return
  }
  func.func @transform_0(%arg0: i32) -> (i32, i32, i32) {
    %c0_i32 = arith.constant 0 : i32
    %c0_i32_0 = arith.constant 0 : i32
    %c0_i32_1 = arith.constant 0 : i32
    return %arg0, %c0_i32, %c0_i32_0 : i32, i32, i32
  }
  func.func @transform_1(%arg0: i32) -> (i32, i32, i32) {
    %c0_i32 = arith.constant 0 : i32
    %c0_i32_0 = arith.constant 0 : i32
    %c0_i32_1 = arith.constant 0 : i32
    return %arg0, %c0_i32, %c0_i32_0 : i32, i32, i32
  }
  func.func @transform_2(%arg0: i32) -> (i32, i32, i32) {
    %c0_i32 = arith.constant 0 : i32
    %c0_i32_0 = arith.constant 0 : i32
    %c0_i32_1 = arith.constant 0 : i32
    return %arg0, %c0_i32, %c0_i32_0 : i32, i32, i32
  }
  func.func @transform_3(%arg0: i32) -> (i32, i32) {
    %c0_i32 = arith.constant 0 : i32
    %c0_i32_0 = arith.constant 0 : i32
    %c0_i32_1 = arith.constant 0 : i32
    return %c0_i32, %c0_i32_0 : i32, i32
  }
  func.func @transform_4(%arg0: i32) -> (i32, i32) {
    %c0_i32 = arith.constant 0 : i32
    %c0_i32_0 = arith.constant 0 : i32
    %c0_i32_1 = arith.constant 0 : i32
    return %c0_i32, %c0_i32_0 : i32, i32
  }
  func.func @transform_5(%arg0: i32) -> (i32, i32) {
    %c0_i32 = arith.constant 0 : i32
    %c0_i32_0 = arith.constant 0 : i32
    %c0_i32_1 = arith.constant 0 : i32
    return %c0_i32, %c0_i32_0 : i32, i32
  }
  func.func @transform_6(%arg0: i32) -> (i32, i32, i32) {
    %c0_i32 = arith.constant 0 : i32
    %c0_i32_0 = arith.constant 0 : i32
    %c0_i32_1 = arith.constant 0 : i32
    return %arg0, %c0_i32, %c0_i32_0 : i32, i32, i32
  }
  func.func @transform_7(%arg0: i32) -> (i32, i32, i32) {
    %c0_i32 = arith.constant 0 : i32
    %c0_i32_0 = arith.constant 0 : i32
    %c0_i32_1 = arith.constant 0 : i32
    return %arg0, %c0_i32, %c0_i32_0 : i32, i32, i32
  }
}

</mosaic_0001>

<bundles_post_ra>
// kernel: tpu_custom_call.1
= control target key start
LH: loop header
LB: loop body
LE: loop exit
PB: predicated region body
PF: predicated region fallthrough
CT: control target
= control target key end

     0   :  { %s2376_s0 = inlined_call_operand.hbm [shape: f32[2,8,300], index: 0, kind: input, shape index: {}]   ;;  %s2377_s1 = inlined_call_operand.hbm [shape: f32[2,1,32], index: 1, kind: input, shape index: {}]   ;;  %s2378_s2 = inlined_call_operand.hbm [shape: f32[2,1,32], index: 2, kind: input, shape index: {}]   ;;  %s2379_s3 = inlined_call_operand.hbm [shape: bf16[384,128], index: 3, kind: input, shape index: {}]   ;;  %s2380_s4 = inlined_call_operand.hbm [shape: f32[32,128], index: 4, kind: input, shape index: {}]   ;;  %s2381_s5 = inlined_call_operand.vmem [shape: f32[1,128], index: 5, kind: input, shape index: {}]   ;;  %s2382_s6 = inlined_call_operand.hbm [shape: f32[2,8,32], index: 6, kind: output, shape index: {0}]   ;;  %s2383_s7 = inlined_call_operand.hbm [shape: f32[2,1,32], index: 7, kind: output, shape index: {1}]  }
   0x1   :  { %2390 = sst [smem:[#allocation25_spill]] %s2377_s1 }
   0x2   :  { %2391 = sst [smem:[#allocation26_spill]] %s2379_s3 }
   0x3   :  { %2392 = sst [smem:[#allocation27_spill]] %s2380_s4 }
   0x4   :  { %13 = vsyncpa [#allocation4], 0 }
   0x5   :  { %15 = vsyncpa [#allocation4 + $0x1], 0 }
   0x6   :  { %16 = vsyncpa [#allocation7], 0 }
   0x7   :  { %18 = vsyncpa [#allocation7 + $0x1], 0 }
   0x8   :  { %19 = vsyncpa [#allocation10], 0 }
   0x9   :  { %20 = vsyncpa [#allocation5], 0 }
   0xa   :  { %22 = vsyncpa [#allocation5 + $0x1], 0 }
   0xb   :  { %23 = vsyncpa [#allocation14], 0 }
   0xc   :  { %25 = vsyncpa [#allocation14 + $0x1], 0  ;;  %s2047_s24 = smov 0   ;;  %s2049_s25 = smov 0  }
   0xd   :  { %s2051_s26 = smov 0   ;;  %s2053_s27 = smov 0  }
   0xe LB: > { %2393 = sst [smem:[#allocation20_spill]] %s1983_s24  ;;  %s2071_s8 = sadd.s32 4294967295, %s1995_s27   ;;  %s1995_s27 = sphi %s2053_s27, %s2412_s27   ;;  %s1991_s26 = sphi %s2051_s26, %s2414_s26   ;;  %s1987_s25 = sphi %s2049_s25, %s2416_s25   ;;  %s1983_s24 = sphi %s2047_s24, %s2415_s24  }
   0xf   : > { %2394 = sst [smem:[#allocation21_spill]] %s1991_s26  ;;  %p1431_p0 = scmp.ge.s32.totalorder %s1995_s27, 1 }
  0x10   : > { %s2395_s3 = sld [smem:[#allocation26_spill]]  ;;  %p2388_p1 = scmp.eq.s32.totalorder %s2071_s8, 0 }
  0x11   : > { %p229_p2 = scmp.lt.s32.totalorder %s1995_s27, 3  ;;  %s1997_s10 = smov [#allocation9]  }
  0x12   : > { %s242_s11 = sshll.u32 %s1997_s10, 4  ;;  %s1998_s13 = smov 64   ;;  %s243_s11 = int_to_ptr.vmem [resolvable:$true] %s242_s11 }
  0x13   : > { %p2076_p3 = pnand %p1431_p0, %p229_p2  ;;  %s1999_s14 = smov 4  }
  0x14   : > { %s1430_s15 = sadd.s32 4294967294, %s1995_s27   ;;  %s2093_s16 = sadd.s32 1, %s1995_s27  }
  0x15   : > { %p1601_p4 = pneg %p2076_p3  ;;  %2398 = sst [smem:[#allocation22_spill]] %s2093_s16 }
  0x16   : > { %s240_s30 = sshll.u32 %s2395_s3, 4  ;;  %s38_s17 = sadd.s32 1, %s1991_s26  ;;  %s241_s30 = int_to_ptr.hbm [resolvable:$true] %s240_s30 }
  0x17   : > { %p2085_p6 = pnand %p1601_p4, %p2388_p1  ;;  %s35_s18 = ssub.s32 %s1995_s27, %s2093_s16 }
  0x18   : > { %p45_p7 = scmp.ne.s32.totalorder %s1991_s26, %s1987_s25  ;;  %p36_p8 = scmp.eq.s32.totalorder %s35_s18, 0 }
  0x19   : > { %1604 = dma.hbm_to_vmem [thread:$0]  (!%p2085_p6), %s241_s30, 3072, %s243_s11, [#allocation10], %s1998_s13, %s1998_s13, %s1999_s14  }
  0x1a   : > { %p46_p9 = scmp.eq.s32.totalorder %s1995_s27, 0  ;;  %p51_p10 = scmp.ne.s32.totalorder %s1987_s25, %s1983_s24 }
  0x1b   : > { %p190_p11 = scmp.eq.s32.totalorder %s2071_s8, 1  ;;  %p196_p2 = scmp.eq.s32.totalorder %s1430_s15, 1 }
  0x1c   : > { %s2105_s19 = scalar_select %p36_p8, %s1991_s26, %s38_s17  }
  0x1d   : > { %p47_p12 = por %p46_p9, %p45_p7  ;;  %p2109_p13 = por %p2388_p1, %p51_p10 }
  0x1e   : > { %2399 = sst [smem:[#allocation23_spill]] %s2105_s19  ;;  %p2113_p0 = por %p190_p11, %p45_p7 }
  0x1f   : > { %p1627_p4 = scmp.lt.s32.totalorder %s1995_s27, 2  ;;  %s2119_s22 = sand.u32 1, %s1991_s26  }
  0x20   : > { %p2121_p5 = por %p196_p2, %p51_p10  ;;  %s293_s28 = sand.u32 1, %s1995_s27  }
  0x21   : > { %p2126_p8 = pnand %p1627_p4, %p47_p12  ;;  %s2405_s1 = sld [smem:[#allocation25_spill]] }
  0x22   : > { %s2402_s23 = scalar_select %p2121_p5, 1, 0 }
  0x23   : > { %s296_s14 = scalar_lea.vmem [#allocation6], %s2119_s22  ;;  %s2406_s4 = sld [smem:[#allocation27_spill]] }
  0x24   : > { %2403 = sst [smem:[#allocation24_spill]] %s2402_s23  ;;  %s303_s15 = sshll.u32 %s296_s14, 4  ;;  %s304_s15 = int_to_ptr.vmem [resolvable:$true] %s303_s15 }
  0x25   : > { %s2138_s19 = scalar_lea.sflag [#allocation7], %s293_s28  ;;  %p1773_p9 = pneg %p2126_p8 }
  0x27   : > { %s299_s11 = scalar_lea.hbm %s2405_s1, %s1995_s27 }
  0x28   : > { %s301_s13 = sshll.u32 %s299_s11, 4  ;;  %s1776_s11 = scalar_lea.hbm %s2405_s1, 2  ;;  %s302_s13 = int_to_ptr.hbm [resolvable:$true] %s301_s13 }
  0x29   : > { %s254_s3 = sshll.u32 %s2406_s4, 4  ;;  %s1769_s26 = sshra.s32 %s302_s13, 4  ;;  %s1770_s26 = int_to_ptr.hbm [resolvable:$true] %s1769_s26  ;;  %s255_s3 = int_to_ptr.hbm [resolvable:$true] %s254_s3 }
  0x2a   : > { %s1771_s16 = scalar_lea.hbm %s1770_s26, 1  ;;  %p1777_p12 = scmp.lt.s32.totalorder %s1770_s26, %s2405_s1 }
  0x2b   : > { %p1772_p7 = scmp.ne.s32.totalorder %s1770_s26, %s1771_s16  ;;  %p1778_p2 = scmp.lt.s32.totalorder %s1776_s11, %s1771_s16 }
  0x2d   : > { %p1774_p10 = pnand %p1773_p9, %p1772_p7  ;;  %p1779_p4 = por %p1778_p2, %p1777_p12 }
  0x2f   : > { %p1775_p11 = pneg %p1774_p10 }
  0x31   : > { %p1780_p1 = pnand %p1779_p4, %p1775_p11 }
  0x33   : > { %1783 = shalt.err (!%p1780_p1)
}
  0x34   : > { %1614 = dma.hbm_to_vmem [thread:$0]  (!%p2126_p8), %s302_s13, 16, %s304_s15, %s2138_s19  }
  0x35   : > { %s2000_s28 = smov [#allocation11]   ;;  %s2001_s18 = smov 128  }
  0x36   : > { %s256_s17 = sshll.u32 %s2000_s28, 4  ;;  %s2002_s23 = smov 8   ;;  %s257_s17 = int_to_ptr.vmem [resolvable:$true] %s256_s17 }
  0x37   : > { %1607 = dma.hbm_to_vmem [thread:$0]  (!%p2085_p6), %s255_s3, 512, %s257_s17, [#allocation10], %s2001_s18, %s2001_s18, %s2002_s23  }
  0x38   : > { %s1580_s26 = smul.u32 24, %s2119_s22  ;;  %s316_s11 = scalar_lea.hbm %s2378_s2, %s1995_s27 }
  0x39   : > { %s1581_s16 = smul.u32 24, %s1995_s27  ;;  %s2165_s28 = sshll.u32 %s316_s11, 4  ;;  %s319_s28 = int_to_ptr.hbm [resolvable:$true] %s2165_s28 }
  0x3a   : > { %s277_s15 = scalar_lea.vmem [#allocation3], %s1580_s26  ;;  %s274_s12 = scalar_lea.sflag [#allocation4], %s2119_s22 }
  0x3b   : > { %s282_s13 = scalar_lea.hbm %s2376_s0, %s1581_s16  ;;  %s286_s4 = sshll.u32 %s277_s15, 4  ;;  %s287_s4 = int_to_ptr.vmem [resolvable:$true] %s286_s4 }
  0x3c   : > { %s284_s24 = sshll.u32 %s282_s13, 4  ;;  %s1836_s1 = scalar_lea.hbm %s2376_s0, 48  ;;  %s285_s24 = int_to_ptr.hbm [resolvable:$true] %s284_s24 }
  0x3d   : > { %s1829_s3 = sshra.s32 %s285_s24, 4  ;;  %s1830_s3 = int_to_ptr.hbm [resolvable:$true] %s1829_s3 }
  0x3e   : > { %s1831_s17 = scalar_lea.hbm %s1830_s3, 24  ;;  %p1837_p10 = scmp.lt.s32.totalorder %s1830_s3, %s2376_s0 }
  0x3f   : > { %p1832_p1 = scmp.ne.s32.totalorder %s1830_s3, %s1831_s17  ;;  %p1838_p11 = scmp.lt.s32.totalorder %s1836_s1, %s1831_s17 }
  0x41   : > { %p1834_p6 = pnand %p1832_p1, %p1773_p9  ;;  %p1839_p12 = por %p1838_p11, %p1837_p10 }
  0x43   : > { %p1835_p7 = pneg %p1834_p6 }
  0x45   : > { %p1840_p2 = pnand %p1839_p12, %p1835_p7 }
  0x47   : > { %1843 = shalt.err (!%p1840_p2)
}
  0x48   : > { %1611 = dma.hbm_to_vmem [thread:$0]  (!%p2126_p8), %s285_s24, 384, %s287_s4, %s274_s12  }
  0x49   : > { %s313_s30 = scalar_lea.vmem [#allocation8], %s2119_s22  ;;  %s1859_s11 = sshra.s32 %s319_s28, 4  ;;  %s1860_s11 = int_to_ptr.hbm [resolvable:$true] %s1859_s11 }
  0x4a   : > { %s320_s10 = sshll.u32 %s313_s30, 4  ;;  %s1861_s14 = scalar_lea.hbm %s1860_s11, 1  ;;  %s321_s10 = int_to_ptr.vmem [resolvable:$true] %s320_s10 }
  0x4b   : > { %p1862_p4 = scmp.ne.s32.totalorder %s1860_s11, %s1861_s14  ;;  %s1866_s3 = scalar_lea.hbm %s2378_s2, 2 }
  0x4c   : > { %p1867_p7 = scmp.lt.s32.totalorder %s1860_s11, %s2378_s2  ;;  %p1868_p10 = scmp.lt.s32.totalorder %s1866_s3, %s1861_s14 }
  0x4d   : > { %p1864_p1 = pnand %p1862_p4, %p1773_p9 }
  0x4e   : > { %p1869_p11 = por %p1868_p10, %p1867_p7 }
  0x4f   : > { %p1865_p6 = pneg %p1864_p1 }
  0x51   : > { %p1870_p12 = pnand %p1869_p11, %p1865_p6 }
  0x53   : > { %1873 = shalt.err (!%p1870_p12)
}
  0x54   : > { %1617 = dma.hbm_to_vmem [thread:$0]  (!%p2126_p8), %s319_s28, 16, %s321_s10, %s2138_s19  }
  0x55   : > { %329 = sbr.rel (%p2076_p3) target bundleno = 4799 (0x12bf), region = 44  ;;  %s2196_s4 = sand.u32 (!%p2076_p3), 1, %s1987_s25  }
  0x56   : > { %s1582_s24 = smul.u32 (!%p2076_p3), 24, %s2196_s4  ;;  %s332_s22 = scalar_lea.sflag (!%p2076_p3), [#allocation4], %s2196_s4 }
  0x58   : > { %s2200_s12 = scalar_lea.vmem (!%p2076_p3), [#allocation3], %s1582_s24 }
  0x5a   : > { %1962 = dma.done.wait (%p2109_p13), %s332_s22, 384  }
  0x5b   : > { %1964 = vsyncadd (%p2109_p13), %s332_s22, 4294966912  ;;  %s341_s9 = sand.u32 1, %s2071_s8   ;;  %s344_s29 = scalar_lea.vmem [#allocation6], %s2196_s4 }
  0x5c   : > { %s342_s19 = scalar_lea.sflag [#allocation7], %s341_s9 }
  0x5d   : > { %1966 = dma.done.wait (%p2109_p13), %s342_s19, 32  }
  0x5e   : > { %1968 = vsyncadd (%p2109_p13), %s342_s19, 4294967264  ;;  %s353_s28 = scalar_lea.vmem [#allocation8], %s2196_s4  ;;  %p2407_p3 = scmp.eq.s32.totalorder %s2071_s8, 0 }
  0x60   : > { %1970 = dma.done.wait (%p2407_p3), [#allocation10], 3584   ;;  %p2408_p8 = pmov %p2407_p3 }
  0x61   : > { %v2003_v0 = vmov 0.0   ;;  %v1563_v1 = vld [vmem:[#allocation9 + $0x38] sm:$0xff]  ;;  %v1562_v4 = vld [vmem:[#allocation9 + $0x30] sm:$0xff]  ;;  %v1561_v7 = vld [vmem:[#allocation9 + $0x28] sm:$0xff]  ;;  %vm415_vm0 = vcmask 359424   ;;  %vm664_vm1 = vcmask 261120   ;;  %s1273_s11 = scalar_lea.hbm %s2383_s7, %s2071_s8 }
  0x62   : > { %1972 = vsyncadd (%p2408_p8), [#allocation10], 4294963712  ;;  %409 = vst [vmem:[#allocation2 + $0x10] sm:$0xff] %v2003_v0  ;;  %v1571_v2 = vld [vmem:[#allocation9 + $0x78] sm:$0xff]  ;;  %619 = vmatpush.bf16.msra.mxu0 %v1563_v1  ;;  %v1570_v5 = vld [vmem:[#allocation9 + $0x70] sm:$0xff]  ;;  %s2004_s1 = smov 64  }
  0x63   : > { %v1579_v3 = vld [vmem:[#allocation9 + $0xb8] sm:$0xff]  ;;  %632 = vmatpush.bf16.msra.mxu1 %v1571_v2  ;;  %v1578_v6 = vld [vmem:[#allocation9 + $0xb0] sm:$0xff]  ;;  %v1569_v8 = vld [vmem:[#allocation9 + $0x68] sm:$0xff]  ;;  %s2005_s26 = smov 32   ;;  %vm1220_vm14 = vcmask 1040384   ;;  %vm1222_vm15 = vcmask 1041408  }
  0x64   : > { %645 = vmatpush.bf16.msra.mxu2 %v1579_v3  ;;  %v1577_v9 = vld [vmem:[#allocation9 + $0xa8] sm:$0xff]  ;;  %v2217_v10 = vld [vmem:[#allocation11 + $0x18] sm:$0xff]  ;;  %v1560_v11 = vld [vmem:[#allocation9 + $0x20] sm:$0xff]  ;;  %s2006_s16 = smov 96   ;;  %s406_s14 = scalar_lea.vmem [#allocation13], %s2196_s4 }
  0x65   : > { %680 = vmatpush.msra.mxu3 %v2217_v10  ;;  %v2220_v12 = vld [vmem:[#allocation11 + $0x10] sm:$0xff]  ;;  %v1568_v13 = vld [vmem:[#allocation9 + $0x60] sm:$0xff]  ;;  %v2224_v16 = vld [vmem:[#allocation11 + $0x8] sm:$0xff]  ;;  %s1275_s13 = sshll.u32 %s406_s14, 4  ;;  %s1277_s15 = sshll.u32 %s1273_s11, 4  ;;  %s1276_s13 = int_to_ptr.vmem [resolvable:$true] %s1275_s13  ;;  %s1278_s15 = int_to_ptr.hbm [resolvable:$true] %s1277_s15 }
  0x66   : > { %620 = vmatpush.bf16.msra.mxu0 %v1562_v4  ;;  %v410_v14 = vld [vmem:[%s2200_s12] sm:$0xff]  ;;  %v412_v15 = vld [vmem:[%s2200_s12 + $0x10] sm:$0xff]  ;;  %v411_v17 = vld [vmem:[%s2200_s12 + $0x8] sm:$0xff]  ;;  %s1251_s3 = scalar_lea.sflag [#allocation14], %s2196_s4  ;;  %s1903_s17 = sshra.s32 %s1278_s15, 4  ;;  %s1904_s17 = int_to_ptr.hbm [resolvable:$true] %s1903_s17 }
  0x67   : > { %633 = vmatpush.bf16.msra.mxu1 %v1570_v5  ;;  %v1576_v18 = vld [vmem:[#allocation9 + $0xa0] sm:$0xff]  ;;  %681 = vmatpush.msra.mxu3 %v2220_v12  ;;  %416 = vst.msk [vmem:[#allocation2 + $0x10] sm:$0xff] %vm415_vm0, %v412_v15  ;;  %v662_v20 = vld [vmem:[%s344_s29] sm:$0x1]  ;;  %v1559_v21 = vld [vmem:[#allocation9 + $0x18] sm:$0xff]  ;;  %v420_v34 = vpack.c.bf16 %v410_v14, %v410_v14  ;;  %v421_v35 = vpack.c.bf16 %v411_v17, %v411_v17  ;;  %s1905_s18 = scalar_lea.hbm %s1904_s17, 1  ;;  %p1910_p4 = scmp.lt.s32.totalorder %s1904_s17, %s2383_s7 }
  0x68   : > { %646 = vmatpush.bf16.msra.mxu2 %v1578_v6  ;;  %v2228_v19 = vld [vmem:[#allocation11] sm:$0xff]  ;;  %v1567_v22 = vld [vmem:[#allocation9 + $0x58] sm:$0xff]  ;;  %v1558_v24 = vld [vmem:[#allocation9 + $0x10] sm:$0xff]  ;;  %p1906_p13 = scmp.ne.s32.totalorder %s1904_s17, %s1905_s18  ;;  %s1909_s12 = scalar_lea.hbm %s2383_s7, 2 }
  0x69   : > { %682 = vmatpush.msra.mxu3 %v2224_v16  ;;  %v1575_v23 = vld [vmem:[#allocation9 + $0x98] sm:$0xff]  ;;  %v1566_v25 = vld [vmem:[#allocation9 + $0x50] sm:$0xff]  ;;  %v1557_v27 = vld [vmem:[#allocation9 + $0x8] sm:$0xff]  ;;  %p1911_p1 = scmp.lt.s32.totalorder %s1909_s12, %s1905_s18 }
  0x6a   : > { %621 = vmatpush.bf16.msra.mxu0 %v1561_v7  ;;  %v1574_v26 = vld [vmem:[#allocation9 + $0x90] sm:$0xff]  ;;  %v1565_v28 = vld [vmem:[#allocation9 + $0x48] sm:$0xff]  ;;  %v1556_v30 = vld [vmem:[#allocation9] sm:$0xff]  ;;  %p1907_p9 = pnand %p1906_p13, %p2113_p0 }
  0x6b   : > { %634 = vmatpush.bf16.msra.mxu1 %v1569_v8  ;;  %683 = vmatpush.msra.mxu3 %v2228_v19  ;;  %v1573_v29 = vld [vmem:[#allocation9 + $0x88] sm:$0xff]  ;;  %v1564_v31 = vld [vmem:[#allocation9 + $0x40] sm:$0xff]  ;;  %v1673_v37 = vld [vmem:[%s2381_s5] ss:$0 sm:$0xff]  ;;  %p1912_p6 = por %p1911_p1, %p1910_p4 }
  0x6c   : > { %647 = vmatpush.bf16.msra.mxu2 %v1577_v9  ;;  %1536 = vmatmul.msk.f32.vlgmr.msra.gmra.mxu3 %vm664_vm1, %v662_v20  ;;  %v1572_v32 = vld [vmem:[#allocation9 + $0x80] sm:$0xff]  ;;  %v1674_v50 = vld [vmem:[%s353_s28] ss:$0 sm:$0xff]  ;;  %p1908_p2 = pneg %p1907_p9 }
  0x6d   : > { %748 = vmatpush.msrb.mxu3 %v2217_v10 }
  0x6e   : > { %622 = vmatpush.bf16.msra.mxu0 %v1560_v11  ;;  %v419_v33 = vld [vmem:[#allocation2 + $0x10] sm:$0xff]  ;;  %p1913_p7 = pnand %p1912_p6, %p1908_p2 }
  0x6f   : > { %635 = vmatpush.bf16.msra.mxu1 %v1568_v13  ;;  %749 = vmatpush.msrb.mxu3 %v2220_v12  ;;  %v422_v36 = vpack.c.bf16 %v419_v33, %v419_v33 }
  0x70   : > { %648 = vmatpush.bf16.msra.mxu2 %v1576_v18 }
  0x71   : > { %750 = vmatpush.msrb.mxu3 %v2224_v16 }
  0x72   : > { %623 = vmatpush.bf16.msra.mxu0 %v1559_v21 }
  0x73   : > { %636 = vmatpush.bf16.msra.mxu1 %v1567_v22  ;;  %751 = vmatpush.msrb.mxu3 %v2228_v19 }
  0x74   : > { %649 = vmatpush.bf16.msra.mxu2 %v1575_v23 }
  0x75   : > { %818 = vmatpush.msra.mxu3 %v2217_v10 }
  0x76   : > { %624 = vmatpush.bf16.msra.mxu0 %v1558_v24 }
  0x77   : > { %637 = vmatpush.bf16.msra.mxu1 %v1566_v25  ;;  %819 = vmatpush.msra.mxu3 %v2220_v12 }
  0x78   : > { %650 = vmatpush.bf16.msra.mxu2 %v1574_v26 }
  0x79   : > { %820 = vmatpush.msra.mxu3 %v2224_v16 }
  0x7a   : > { %625 = vmatpush.bf16.msra.mxu0 %v1557_v27 }
  0x7b   : > { %638 = vmatpush.bf16.msra.mxu1 %v1565_v28  ;;  %821 = vmatpush.msra.mxu3 %v2228_v19 }
  0x7c   : > { %651 = vmatpush.bf16.msra.mxu2 %v1573_v29 }
  0x7e   : > { %626 = vmatpush.bf16.msra.mxu0 %v1556_v30 }
  0x7f   : > { %639 = vmatpush.bf16.msra.mxu1 %v1564_v31 }
  0x80   : > { %652 = vmatpush.bf16.msra.mxu2 %v1572_v32 }
  0x81   : > { %627 = vmatmul.bf16.vlgmr.msra.gmra.mxu0 %v420_v34 }
  0x82   : > { %1028 = vmatpush.msrb.mxu0 %v2217_v10  ;;  %640 = vmatmul.bf16.vlgmr.msra.gmra.mxu1 %v421_v35 }
  0x83   : > { %1098 = vmatpush.msrb.mxu1 %v2217_v10  ;;  %653 = vmatmul.bf16.vlgmr.msra.gmra.mxu2 %v422_v36 }
  0x84   : > { %1029 = vmatpush.msrb.mxu0 %v2220_v12  ;;  %1168 = vmatpush.msrb.mxu2 %v2217_v10 }
  0x85   : > { %1099 = vmatpush.msrb.mxu1 %v2220_v12 }
  0x86   : > { %1030 = vmatpush.msrb.mxu0 %v2224_v16  ;;  %1169 = vmatpush.msrb.mxu2 %v2220_v12 }
  0x87   : > { %1100 = vmatpush.msrb.mxu1 %v2224_v16 }
  0x88   : > { %1031 = vmatpush.msrb.mxu0 %v2228_v19  ;;  %1170 = vmatpush.msrb.mxu2 %v2224_v16 }
  0x89   : > { %1101 = vmatpush.msrb.mxu1 %v2228_v19 }
  0x8a   : > { %1171 = vmatpush.msrb.mxu2 %v2228_v19 }
  0xef   : > { %v685_v43 = vpop.f32.mrf.mxu3 }
  0xfe   : > { %v628_v38 = vpop.f32.mrf.mxu0 }
  0xff   : > { %v641_v39 = vpop.f32.mrf.mxu1  ;;  %v629_v40 = vadd.f32 %v1673_v37, %v628_v38 }
 0x101   : > { %v642_v41 = vadd.f32 %v641_v39, %v629_v40 }
 0x106   : > { %v654_v42 = vpop.f32.mrf.mxu2  ;;  %v630_v45 = vpop.f32.mrf.mxu0 }
 0x107   : > { %v2258_v44 = vadd.f32 %v654_v42, %v642_v41  ;;  %v643_v46 = vpop.f32.mrf.mxu1 }
 0x109   : > { %v688_v47 = vadd.f32 %v685_v43, %v2258_v44 }
 0x10b   : > { %1675 = vtanh.f32 %v688_v47  ;;  %v1537_v51 = vmul.f32 -1.442695, %v688_v47 }
 0x10d   : > { %1677 = vpow2.f32 %v1537_v51 }
 0x10e   : > { %v656_v48 = vpop.f32.mrf.mxu2 }
 0x111   : > { %v1676_v49 = vpop.eup %1675 }
 0x112   : > { %716 = vrot.lane.b32.xlu0 %v1676_v49, %s2004_s1 }
 0x113   : > { %v1678_v52 = vpop.eup %1677 }
 0x114   : > { %v692_v53 = vadd.f32 1.0, %v1678_v52 }
 0x116   : > { %1679 = vrcp.f32 %v692_v53  ;;  %v704_v59 = vand.u32 2147483648, %v692_v53  ;;  %vm698_vm3 = vweird.f32 %v692_v53  ;;  %v702_v60 = vand.u32 2147483647, %v692_v53 }
 0x118   : > { %v705_v62 = vor.u32 1.1754944e-38, %v704_v59  ;;  %vm703_vm5 = vcmp.eq.f32.partialorder %v702_v60, 8.507059e+37 }
 0x11a   : > { %711 = vrot.lane.b32.xlu0 %v1674_v50, %s2005_s26 }
 0x11c   : > { %v1680_v54 = vpop.eup %1679 }
 0x11d   : > { %v694_v55 = vmul.f32 %v1680_v54, %v692_v53  ;;  %vm699_vm2 = vweird.f32 %v1680_v54 }
 0x11e   : > { %vm700_vm4 = vmor %vm698_vm3, %vm699_vm2 }
 0x11f   : > { %v695_v56 = vsub.f32 1.0, %v694_v55 }
 0x121   : > { %v696_v57 = vmul.f32 %v1680_v54, %v695_v56 }
 0x123   : > { %v697_v58 = vadd.f32 %v1680_v54, %v696_v57 }
 0x125   : > { %v701_v61 = vsel %vm700_vm4, %v1680_v54, %v697_v58 }
 0x126   : > { %v706_v0 = vsel %vm703_vm5, %v705_v62, %v701_v61  ;;  %vm1224_vm5 = vcmask 1042432  }
 0x184   : > { %v717_v63 = vpop.permute.xlu0 %716 }
 0x185   : > { %v719_v1 = vmul.f32 %v717_v63, %v706_v0 }
 0x187   : > { %721 = vrot.lane.b32.xlu1 %v719_v1, %s2005_s26 }
 0x18c   : > { %v712_v2 = vpop.permute.xlu0 %711 }
 0x18d   : > { %v714_v3 = vmul.f32 %v712_v2, %v706_v0 }
 0x1f9   : > { %v722_v4 = vpop.permute.xlu1 %721 }
 0x1fa   : > { %v724_v5 = vadd.f32 %v722_v4, %v714_v3 }
 0x1fc   : > { %1681 = vtanh.f32 %v724_v5  ;;  %v781_v33 = vrot.slane %v724_v5, 7 }
 0x202   : > { %v1682_v6 = vpop.eup %1681 }
 0x203   : > { %727 = vrot.lane.b32.xlu1 %v1682_v6, %s2004_s1 }
 0x275   : > { %v728_v7 = vpop.permute.xlu1 %727 }
 0x276   : > { %v2267_v8 = vmul.f32 %v728_v7, %v706_v0 }
 0x278   : > { %732 = vrot.lane.b32.xlu2 %v2267_v8, %s2005_s26 }
 0x2d2   : > { %v733_v9 = vpop.permute.xlu2 %732 }
 0x2d3   : > { %1538 = vmatmul.msk.f32.vlgmr.msrb.gmra.mxu3 %vm664_vm1, %v733_v9 }
 0x2d4   : > { %888 = vmatpush.msrb.mxu3 %v2217_v10 }
 0x2d6   : > { %889 = vmatpush.msrb.mxu3 %v2220_v12 }
 0x2d8   : > { %890 = vmatpush.msrb.mxu3 %v2224_v16 }
 0x2da   : > { %891 = vmatpush.msrb.mxu3 %v2228_v19 }
 0x356   : > { %v753_v11 = vpop.f32.mrf.mxu3 }
 0x357   : > { %v757_v13 = vrot.slane %v753_v11, 7 }
 0x359   : > { %v759_v14 = vadd.f32 %v757_v13, %v2258_v44 }
 0x35b   : > { %1683 = vtanh.f32 %v759_v14  ;;  %v1539_v17 = vmul.f32 -1.442695, %v759_v14 }
 0x35d   : > { %1685 = vpow2.f32 %v1539_v17 }
 0x361   : > { %v1684_v15 = vpop.eup %1683 }
 0x362   : > { %785 = vrot.lane.b32.xlu2 %v1684_v15, %s2004_s1 }
 0x363   : > { %v1686_v18 = vpop.eup %1685 }
 0x364   : > { %v763_v20 = vadd.f32 1.0, %v1686_v18 }
 0x366   : > { %1687 = vrcp.f32 %v763_v20  ;;  %v775_v26 = vand.u32 2147483648, %v763_v20  ;;  %vm769_vm7 = vweird.f32 %v763_v20  ;;  %v773_v27 = vand.u32 2147483647, %v763_v20 }
 0x368   : > { %v776_v29 = vor.u32 1.1754944e-38, %v775_v26  ;;  %vm774_vm9 = vcmp.eq.f32.partialorder %v773_v27, 8.507059e+37 }
 0x36c   : > { %v1688_v21 = vpop.eup %1687 }
 0x36d   : > { %v765_v22 = vmul.f32 %v1688_v21, %v763_v20  ;;  %vm770_vm6 = vweird.f32 %v1688_v21 }
 0x36e   : > { %vm771_vm8 = vmor %vm769_vm7, %vm770_vm6 }
 0x36f   : > { %v766_v23 = vsub.f32 1.0, %v765_v22 }
 0x371   : > { %v767_v24 = vmul.f32 %v1688_v21, %v766_v23 }
 0x373   : > { %v768_v25 = vadd.f32 %v1688_v21, %v767_v24 }
 0x375   : > { %v772_v28 = vsel %vm771_vm8, %v1688_v21, %v768_v25 }
 0x376   : > { %v777_v31 = vsel %vm774_vm9, %v776_v29, %v772_v28 }
 0x377   : > { %v783_v34 = vmul.f32 %v781_v33, %v777_v31 }
 0x3bc   : > { %v786_v30 = vpop.permute.xlu2 %785 }
 0x3bd   : > { %v788_v32 = vmul.f32 %v786_v30, %v777_v31 }
 0x3bf   : > { %790 = vrot.lane.b32.xlu0 %v788_v32, %s2005_s26 }
 0x431   : > { %v791_v35 = vpop.permute.xlu0 %790 }
 0x432   : > { %v793_v36 = vadd.f32 %v791_v35, %v783_v34 }
 0x434   : > { %1689 = vtanh.f32 %v793_v36  ;;  %v851_v58 = vrot.slane %v793_v36, 7 }
 0x43a   : > { %v1690_v37 = vpop.eup %1689 }
 0x43b   : > { %796 = vrot.lane.b32.xlu1 %v1690_v37, %s2004_s1 }
 0x4ad   : > { %v797_v38 = vpop.permute.xlu1 %796 }
 0x4ae   : > { %v799_v39 = vmul.f32 %v797_v38, %v777_v31 }
 0x4b0   : > { %v801_v40 = vrot.slane %v799_v39, 1  ;;  %v1221_v1 = vsel %vm1220_vm14, %v2267_v8, %v799_v39 }
 0x4b2   : > { %802 = vrot.lane.b32.xlu2 %v801_v40, %s2005_s26 }
 0x50c   : > { %v803_v41 = vpop.permute.xlu2 %802 }
 0x50d   : > { %1540 = vmatmul.msk.f32.vlgmr.msra.gmra.mxu3 %vm664_vm1, %v803_v41 }
 0x50e   : > { %958 = vmatpush.msra.mxu3 %v2217_v10 }
 0x510   : > { %959 = vmatpush.msra.mxu3 %v2220_v12 }
 0x512   : > { %960 = vmatpush.msra.mxu3 %v2224_v16 }
 0x514   : > { %961 = vmatpush.msra.mxu3 %v2228_v19 }
 0x590   : > { %v823_v42 = vpop.f32.mrf.mxu3 }
 0x591   : > { %v827_v43 = vrot.slane %v823_v42, 6 }
 0x593   : > { %v829_v45 = vadd.f32 %v827_v43, %v2258_v44 }
 0x595   : > { %1691 = vtanh.f32 %v829_v45  ;;  %v1541_v47 = vmul.f32 -1.442695, %v829_v45 }
 0x597   : > { %1693 = vpow2.f32 %v1541_v47 }
 0x59b   : > { %v1692_v46 = vpop.eup %1691 }
 0x59c   : > { %855 = vrot.lane.b32.xlu0 %v1692_v46, %s2004_s1 }
 0x59d   : > { %v1694_v48 = vpop.eup %1693 }
 0x59e   : > { %v833_v49 = vadd.f32 1.0, %v1694_v48 }
 0x5a0   : > { %1695 = vrcp.f32 %v833_v49  ;;  %v845_v19 = vand.u32 2147483648, %v833_v49  ;;  %vm839_vm11 = vweird.f32 %v833_v49  ;;  %v843_v52 = vand.u32 2147483647, %v833_v49 }
 0x5a2   : > { %v846_v54 = vor.u32 1.1754944e-38, %v845_v19  ;;  %vm844_vm13 = vcmp.eq.f32.partialorder %v843_v52, 8.507059e+37 }
 0x5a6   : > { %v1696_v10 = vpop.eup %1695 }
 0x5a7   : > { %v835_v50 = vmul.f32 %v1696_v10, %v833_v49  ;;  %vm840_vm10 = vweird.f32 %v1696_v10 }
 0x5a8   : > { %vm841_vm12 = vmor %vm839_vm11, %vm840_vm10  ;;  %vm1226_vm10 = vcmask 1043456  }
 0x5a9   : > { %v836_v12 = vsub.f32 1.0, %v835_v50 }
 0x5ab   : > { %v837_v51 = vmul.f32 %v1696_v10, %v836_v12 }
 0x5ad   : > { %v838_v16 = vadd.f32 %v1696_v10, %v837_v51 }
 0x5af   : > { %v842_v53 = vsel %vm841_vm12, %v1696_v10, %v838_v16 }
 0x5b0   : > { %v847_v56 = vsel %vm844_vm13, %v846_v54, %v842_v53 }
 0x5b1   : > { %v853_v59 = vmul.f32 %v851_v58, %v847_v56 }
 0x60e   : > { %v856_v55 = vpop.permute.xlu0 %855 }
 0x60f   : > { %v858_v57 = vmul.f32 %v856_v55, %v847_v56 }
 0x611   : > { %860 = vrot.lane.b32.xlu1 %v858_v57, %s2005_s26 }
 0x683   : > { %v861_v60 = vpop.permute.xlu1 %860 }
 0x684   : > { %v863_v61 = vadd.f32 %v861_v60, %v853_v59 }
 0x686   : > { %1697 = vtanh.f32 %v863_v61  ;;  %v921_v28 = vrot.slane %v863_v61, 7 }
 0x68c   : > { %v1698_v62 = vpop.eup %1697 }
 0x68d   : > { %866 = vrot.lane.b32.xlu2 %v1698_v62, %s2004_s1 }
 0x6e7   : > { %v867_v63 = vpop.permute.xlu2 %866 }
 0x6e8   : > { %v869_v0 = vmul.f32 %v867_v63, %v847_v56 }
 0x6ea   : > { %v871_v2 = vrot.slane %v869_v0, 2  ;;  %v1223_v3 = vsel %vm1222_vm15, %v1221_v1, %v869_v0  ;;  %vm1228_vm15 = vcmask 1044480  }
 0x6ec   : > { %872 = vrot.lane.b32.xlu0 %v871_v2, %s2005_s26 }
 0x75e   : > { %v873_v4 = vpop.permute.xlu0 %872 }
 0x75f   : > { %1542 = vmatmul.msk.f32.vlgmr.msrb.gmra.mxu3 %vm664_vm1, %v873_v4 }
 0x7e2   : > { %v893_v5 = vpop.f32.mrf.mxu3 }
 0x7e3   : > { %v897_v6 = vrot.slane %v893_v5, 5 }
 0x7e5   : > { %v899_v7 = vadd.f32 %v897_v6, %v2258_v44 }
 0x7e7   : > { %1699 = vtanh.f32 %v899_v7  ;;  %v1543_v11 = vmul.f32 -1.442695, %v899_v7 }
 0x7e9   : > { %1701 = vpow2.f32 %v1543_v11 }
 0x7ed   : > { %v1700_v9 = vpop.eup %1699 }
 0x7ee   : > { %925 = vrot.lane.b32.xlu1 %v1700_v9, %s2004_s1 }
 0x7ef   : > { %v1702_v13 = vpop.eup %1701 }
 0x7f0   : > { %v903_v14 = vadd.f32 1.0, %v1702_v13 }
 0x7f2   : > { %1703 = vrcp.f32 %v903_v14  ;;  %v915_v21 = vand.u32 2147483648, %v903_v14  ;;  %vm909_vm2 = vweird.f32 %v903_v14  ;;  %v913_v22 = vand.u32 2147483647, %v903_v14 }
 0x7f4   : > { %v916_v24 = vor.u32 1.1754944e-38, %v915_v21  ;;  %vm914_vm4 = vcmp.eq.f32.partialorder %v913_v22, 8.507059e+37 }
 0x7f8   : > { %v1704_v8 = vpop.eup %1703 }
 0x7f9   : > { %v905_v15 = vmul.f32 %v1704_v8, %v903_v14  ;;  %vm910_vm0 = vweird.f32 %v1704_v8 }
 0x7fa   : > { %vm911_vm3 = vmor %vm909_vm2, %vm910_vm0 }
 0x7fb   : > { %v906_v17 = vsub.f32 1.0, %v905_v15 }
 0x7fd   : > { %v907_v18 = vmul.f32 %v1704_v8, %v906_v17 }
 0x7ff   : > { %v908_v20 = vadd.f32 %v1704_v8, %v907_v18 }
 0x801   : > { %v912_v23 = vsel %vm911_vm3, %v1704_v8, %v908_v20 }
 0x802   : > { %v917_v26 = vsel %vm914_vm4, %v916_v24, %v912_v23 }
 0x803   : > { %v923_v29 = vmul.f32 %v921_v28, %v917_v26 }
 0x860   : > { %v926_v25 = vpop.permute.xlu1 %925 }
 0x861   : > { %v928_v27 = vmul.f32 %v926_v25, %v917_v26 }
 0x863   : > { %930 = vrot.lane.b32.xlu2 %v928_v27, %s2005_s26 }
 0x8bd   : > { %v931_v30 = vpop.permute.xlu2 %930 }
 0x8be   : > { %v933_v31 = vadd.f32 %v931_v30, %v923_v29 }
 0x8c0   : > { %1705 = vtanh.f32 %v933_v31  ;;  %v991_v54 = vrot.slane %v933_v31, 7 }
 0x8c6   : > { %v1706_v32 = vpop.eup %1705 }
 0x8c7   : > { %936 = vrot.lane.b32.xlu0 %v1706_v32, %s2004_s1 }
 0x939   : > { %v937_v33 = vpop.permute.xlu0 %936 }
 0x93a   : > { %v939_v34 = vmul.f32 %v937_v33, %v917_v26 }
 0x93c   : > { %v941_v35 = vrot.slane %v939_v34, 3  ;;  %v1225_v36 = vsel %vm1224_vm5, %v1223_v3, %v939_v34  ;;  %vm1230_vm5 = vcmask 1045504  }
 0x93e   : > { %942 = vrot.lane.b32.xlu1 %v941_v35, %s2005_s26 }
 0x9b0   : > { %v943_v37 = vpop.permute.xlu1 %942 }
 0x9b1   : > { %1544 = vmatmul.msk.f32.vlgmr.msra.gmra.mxu3 %vm664_vm1, %v943_v37 }
 0xa34   : > { %v963_v38 = vpop.f32.mrf.mxu3 }
 0xa35   : > { %v967_v39 = vrot.slane %v963_v38, 4 }
 0xa37   : > { %v969_v40 = vadd.f32 %v967_v39, %v2258_v44 }
 0xa39   : > { %1707 = vtanh.f32 %v969_v40  ;;  %v1545_v42 = vmul.f32 -1.442695, %v969_v40 }
 0xa3b   : > { %1709 = vpow2.f32 %v1545_v42 }
 0xa3f   : > { %v1708_v41 = vpop.eup %1707 }
 0xa40   : > { %995 = vrot.lane.b32.xlu2 %v1708_v41, %s2004_s1 }
 0xa41   : > { %v1710_v43 = vpop.eup %1709 }
 0xa42   : > { %v973_v45 = vadd.f32 1.0, %v1710_v43 }
 0xa44   : > { %1711 = vrcp.f32 %v973_v45  ;;  %v985_v50 = vand.u32 2147483648, %v973_v45  ;;  %vm979_vm7 = vweird.f32 %v973_v45  ;;  %v983_v12 = vand.u32 2147483647, %v973_v45 }
 0xa46   : > { %v986_v16 = vor.u32 1.1754944e-38, %v985_v50  ;;  %vm984_vm9 = vcmp.eq.f32.partialorder %v983_v12, 8.507059e+37 }
 0xa4a   : > { %v1712_v46 = vpop.eup %1711 }
 0xa4b   : > { %v975_v47 = vmul.f32 %v1712_v46, %v973_v45  ;;  %vm980_vm6 = vweird.f32 %v1712_v46 }
 0xa4c   : > { %vm981_vm8 = vmor %vm979_vm7, %vm980_vm6 }
 0xa4d   : > { %v976_v48 = vsub.f32 1.0, %v975_v47 }
 0xa4f   : > { %v977_v49 = vmul.f32 %v1712_v46, %v976_v48 }
 0xa51   : > { %v978_v10 = vadd.f32 %v1712_v46, %v977_v49 }
 0xa53   : > { %v982_v51 = vsel %vm981_vm8, %v1712_v46, %v978_v10 }
 0xa54   : > { %v987_v52 = vsel %vm984_vm9, %v986_v16, %v982_v51 }
 0xa55   : > { %v993_v55 = vmul.f32 %v991_v54, %v987_v52 }
 0xa9a   : > { %v996_v19 = vpop.permute.xlu2 %995 }
 0xa9b   : > { %v998_v53 = vmul.f32 %v996_v19, %v987_v52 }
 0xa9d   : > { %1000 = vrot.lane.b32.xlu0 %v998_v53, %s2005_s26 }
 0xb0f   : > { %v1001_v56 = vpop.permute.xlu0 %1000 }
 0xb10   : > { %v1003_v57 = vadd.f32 %v1001_v56, %v993_v55 }
 0xb12   : > { %1713 = vtanh.f32 %v1003_v57  ;;  %v1061_v23 = vrot.slane %v1003_v57, 7 }
 0xb18   : > { %v1714_v58 = vpop.eup %1713 }
 0xb19   : > { %1006 = vrot.lane.b32.xlu1 %v1714_v58, %s2004_s1 }
 0xb8b   : > { %v1007_v59 = vpop.permute.xlu1 %1006 }
 0xb8c   : > { %v1009_v60 = vmul.f32 %v1007_v59, %v987_v52 }
 0xb8e   : > { %v1011_v61 = vrot.slane %v1009_v60, 4  ;;  %v1227_v62 = vsel %vm1226_vm10, %v1225_v36, %v1009_v60  ;;  %vm1243_vm10 = vcmask 261127  }
 0xb90   : > { %1012 = vrot.lane.b32.xlu2 %v1011_v61, %s2005_s26 }
 0xbea   : > { %v1013_v63 = vpop.permute.xlu2 %1012 }
 0xbeb   : > { %1546 = vmatmul.msk.f32.vlgmr.msrb.gmra.mxu0 %vm664_vm1, %v1013_v63 }
 0xc68   : > { %v1033_v0 = vpop.f32.mrf.mxu0 }
 0xc69   : > { %v1037_v1 = vrot.slane %v1033_v0, 3 }
 0xc6b   : > { %v1039_v2 = vadd.f32 %v1037_v1, %v2258_v44 }
 0xc6d   : > { %1715 = vtanh.f32 %v1039_v2  ;;  %v1547_v4 = vmul.f32 -1.442695, %v1039_v2 }
 0xc6f   : > { %1717 = vpow2.f32 %v1547_v4 }
 0xc73   : > { %v1716_v3 = vpop.eup %1715 }
 0xc74   : > { %1065 = vrot.lane.b32.xlu0 %v1716_v3, %s2004_s1 }
 0xc75   : > { %v1718_v5 = vpop.eup %1717 }
 0xc76   : > { %v1043_v6 = vadd.f32 1.0, %v1718_v5 }
 0xc78   : > { %1719 = vrcp.f32 %v1043_v6  ;;  %v1055_v8 = vand.u32 2147483648, %v1043_v6  ;;  %vm1049_vm12 = vweird.f32 %v1043_v6  ;;  %v1053_v15 = vand.u32 2147483647, %v1043_v6 }
 0xc7a   : > { %v1056_v18 = vor.u32 1.1754944e-38, %v1055_v8  ;;  %vm1054_vm14 = vcmp.eq.f32.partialorder %v1053_v15, 8.507059e+37 }
 0xc7e   : > { %v1720_v7 = vpop.eup %1719 }
 0xc7f   : > { %v1045_v9 = vmul.f32 %v1720_v7, %v1043_v6  ;;  %vm1050_vm11 = vweird.f32 %v1720_v7 }
 0xc80   : > { %vm1051_vm13 = vmor %vm1049_vm12, %vm1050_vm11 }
 0xc81   : > { %v1046_v11 = vsub.f32 1.0, %v1045_v9 }
 0xc83   : > { %v1047_v13 = vmul.f32 %v1720_v7, %v1046_v11 }
 0xc85   : > { %v1048_v14 = vadd.f32 %v1720_v7, %v1047_v13 }
 0xc87   : > { %v1052_v17 = vsel %vm1051_vm13, %v1720_v7, %v1048_v14 }
 0xc88   : > { %v1057_v21 = vsel %vm1054_vm14, %v1056_v18, %v1052_v17 }
 0xc89   : > { %v1063_v24 = vmul.f32 %v1061_v23, %v1057_v21 }
 0xce6   : > { %v1066_v20 = vpop.permute.xlu0 %1065 }
 0xce7   : > { %v1068_v22 = vmul.f32 %v1066_v20, %v1057_v21 }
 0xce9   : > { %1070 = vrot.lane.b32.xlu1 %v1068_v22, %s2005_s26 }
 0xd5b   : > { %v1071_v25 = vpop.permute.xlu1 %1070 }
 0xd5c   : > { %v1073_v26 = vadd.f32 %v1071_v25, %v1063_v24 }
 0xd5e   : > { %1721 = vtanh.f32 %v1073_v26  ;;  %v1131_v51 = vrot.slane %v1073_v26, 7 }
 0xd64   : > { %v1722_v27 = vpop.eup %1721 }
 0xd65   : > { %1076 = vrot.lane.b32.xlu2 %v1722_v27, %s2004_s1 }
 0xdbf   : > { %v1077_v28 = vpop.permute.xlu2 %1076 }
 0xdc0   : > { %v1079_v29 = vmul.f32 %v1077_v28, %v1057_v21 }
 0xdc2   : > { %v1081_v30 = vrot.slane %v1079_v29, 5  ;;  %v1229_v31 = vsel %vm1228_vm15, %v1227_v62, %v1079_v29 }
 0xdc4   : > { %1082 = vrot.lane.b32.xlu0 %v1081_v30, %s2005_s26 }
 0xe36   : > { %v1083_v32 = vpop.permute.xlu0 %1082 }
 0xe37   : > { %1548 = vmatmul.msk.f32.vlgmr.msrb.gmra.mxu1 %vm664_vm1, %v1083_v32 }
 0xeb4   : > { %v1103_v33 = vpop.f32.mrf.mxu1 }
 0xeb5   : > { %v1107_v34 = vrot.slane %v1103_v33, 2 }
 0xeb7   : > { %v1109_v35 = vadd.f32 %v1107_v34, %v2258_v44 }
 0xeb9   : > { %1723 = vtanh.f32 %v1109_v35  ;;  %v1549_v37 = vmul.f32 -1.442695, %v1109_v35 }
 0xebb   : > { %1725 = vpow2.f32 %v1549_v37 }
 0xebf   : > { %v1724_v36 = vpop.eup %1723 }
 0xec0   : > { %1135 = vrot.lane.b32.xlu1 %v1724_v36, %s2004_s1 }
 0xec1   : > { %v1726_v38 = vpop.eup %1725 }
 0xec2   : > { %v1113_v39 = vadd.f32 1.0, %v1726_v38 }
 0xec4   : > { %1727 = vrcp.f32 %v1113_v39  ;;  %v1125_v46 = vand.u32 2147483648, %v1113_v39  ;;  %vm1119_vm2 = vweird.f32 %v1113_v39  ;;  %v1123_v47 = vand.u32 2147483647, %v1113_v39 }
 0xec6   : > { %v1126_v49 = vor.u32 1.1754944e-38, %v1125_v46  ;;  %vm1124_vm4 = vcmp.eq.f32.partialorder %v1123_v47, 8.507059e+37 }
 0xeca   : > { %v1728_v40 = vpop.eup %1727 }
 0xecb   : > { %v1115_v41 = vmul.f32 %v1728_v40, %v1113_v39  ;;  %vm1120_vm0 = vweird.f32 %v1728_v40 }
 0xecc   : > { %vm1121_vm3 = vmor %vm1119_vm2, %vm1120_vm0 }
 0xecd   : > { %v1116_v42 = vsub.f32 1.0, %v1115_v41 }
 0xecf   : > { %v1117_v43 = vmul.f32 %v1728_v40, %v1116_v42 }
 0xed1   : > { %v1118_v45 = vadd.f32 %v1728_v40, %v1117_v43 }
 0xed3   : > { %v1122_v48 = vsel %vm1121_vm3, %v1728_v40, %v1118_v45 }
 0xed4   : > { %v1127_v50 = vsel %vm1124_vm4, %v1126_v49, %v1122_v48 }
 0xed5   : > { %v1133_v16 = vmul.f32 %v1131_v51, %v1127_v50 }
 0xf32   : > { %v1136_v10 = vpop.permute.xlu1 %1135 }
 0xf33   : > { %v1138_v12 = vmul.f32 %v1136_v10, %v1127_v50 }
 0xf35   : > { %1140 = vrot.lane.b32.xlu2 %v1138_v12, %s2005_s26 }
 0xf8f   : > { %v1141_v19 = vpop.permute.xlu2 %1140 }
 0xf90   : > { %v1143_v52 = vadd.f32 %v1141_v19, %v1133_v16 }
 0xf92   : > { %1729 = vtanh.f32 %v1143_v52  ;;  %v1201_v15 = vrot.slane %v1143_v52, 7 }
 0xf98   : > { %v1730_v53 = vpop.eup %1729 }
 0xf99   : > { %1146 = vrot.lane.b32.xlu0 %v1730_v53, %s2004_s1 }
0x100b   : > { %v1147_v54 = vpop.permute.xlu0 %1146 }
0x100c   : > { %v1149_v55 = vmul.f32 %v1147_v54, %v1127_v50 }
0x100e   : > { %v1151_v56 = vrot.slane %v1149_v55, 6  ;;  %v2315_v57 = vsel %vm1230_vm5, %v1229_v31, %v1149_v55 }
0x1010   : > { %1152 = vrot.lane.b32.xlu1 %v1151_v56, %s2005_s26 }
0x1082   : > { %v1153_v58 = vpop.permute.xlu1 %1152 }
0x1083   : > { %1550 = vmatmul.msk.f32.vlgmr.msrb.gmra.mxu2 %vm664_vm1, %v1153_v58 }
0x1106   : > { %v1173_v59 = vpop.f32.mrf.mxu2 }
0x1107   : > { %v1177_v60 = vrot.slane %v1173_v59, 1 }
0x1109   : > { %v1179_v61 = vadd.f32 %v1177_v60, %v2258_v44 }
0x110b   : > { %1731 = vtanh.f32 %v1179_v61  ;;  %v1551_v63 = vmul.f32 -1.442695, %v1179_v61 }
0x110d   : > { %1733 = vpow2.f32 %v1551_v63 }
0x1111   : > { %v1732_v62 = vpop.eup %1731 }
0x1112   : > { %1205 = vrot.lane.b32.xlu2 %v1732_v62, %s2004_s1 }
0x1113   : > { %v1734_v0 = vpop.eup %1733 }
0x1114   : > { %v1183_v1 = vadd.f32 1.0, %v1734_v0 }
0x1116   : > { %1735 = vrcp.f32 %v1183_v1  ;;  %v1195_v7 = vand.u32 2147483648, %v1183_v1  ;;  %vm1189_vm7 = vweird.f32 %v1183_v1  ;;  %v1193_v9 = vand.u32 2147483647, %v1183_v1 }
0x1118   : > { %v1196_v11 = vor.u32 1.1754944e-38, %v1195_v7  ;;  %vm1194_vm9 = vcmp.eq.f32.partialorder %v1193_v9, 8.507059e+37 }
0x111c   : > { %v1736_v2 = vpop.eup %1735 }
0x111d   : > { %v1185_v3 = vmul.f32 %v1736_v2, %v1183_v1  ;;  %vm1190_vm6 = vweird.f32 %v1736_v2 }
0x111e   : > { %vm1191_vm8 = vmor %vm1189_vm7, %vm1190_vm6 }
0x111f   : > { %v1186_v4 = vsub.f32 1.0, %v1185_v3 }
0x1121   : > { %v1187_v5 = vmul.f32 %v1736_v2, %v1186_v4 }
0x1123   : > { %v1188_v6 = vadd.f32 %v1736_v2, %v1187_v5 }
0x1125   : > { %v1192_v44 = vsel %vm1191_vm8, %v1736_v2, %v1188_v6 }
0x1126   : > { %v1197_v14 = vsel %vm1194_vm9, %v1196_v11, %v1192_v44 }
0x1127   : > { %v1203_v17 = vmul.f32 %v1201_v15, %v1197_v14 }
0x116c   : > { %v1206_v13 = vpop.permute.xlu2 %1205 }
0x116d   : > { %v1208_v8 = vmul.f32 %v1206_v13, %v1197_v14 }
0x116f   : > { %1210 = vrot.lane.b32.xlu0 %v1208_v8, %s2005_s26 }
0x11e1   : > { %v1211_v18 = vpop.permute.xlu0 %1210 }
0x11e2   : > { %v1213_v20 = vadd.f32 %v1211_v18, %v1203_v17 }
0x11e4   : > { %1737 = vtanh.f32 %v1213_v20  ;;  %1240 = vrot.lane.b32.xlu0 %v1213_v20, %s2006_s16 }
0x11ea   : > { %v1738_v21 = vpop.eup %1737 }
0x11eb   : > { %1216 = vrot.lane.b32.xlu1 %v1738_v21, %s2004_s1 }
0x1256   : > { %v1241_v22 = vpop.permute.xlu0 %1240 }
0x1257   : > { %1244 = vst.msk [vmem:[%s406_s14 - $0x7] sm:$0x80] %vm1243_vm10, %v1241_v22 }
0x1258   : > { %1916 = shalt.err (!%p1913_p7)
}
0x1259   : > { %1598 = dma.vmem_to_hbm [thread:$0]  (%p2113_p0), %s1276_s13, 16, %s1278_s15, %s1251_s3   ;;  %vm1232_vm11 = vcmask 1046528  }
0x125a   : > { %s1439_s29 = sshll.u32 %s2196_s4, 3  ;;  %s1553_s28 = sshll.u32 %s2071_s8, 3 }
0x125b   : > { %s1260_s1 = scalar_lea.hbm %s2382_s6, %s1553_s28  ;;  %s400_s16 = scalar_lea.vmem [#allocation12], %s1439_s29 }
0x125c   : > { %s1262_s30 = sshll.u32 %s400_s16, 4  ;;  %s1264_s10 = sshll.u32 %s1260_s1, 4  ;;  %s1263_s30 = int_to_ptr.vmem [resolvable:$true] %s1262_s30  ;;  %s1265_s10 = int_to_ptr.hbm [resolvable:$true] %s1264_s10 }
0x125d   : > { %v1217_v23 = vpop.permute.xlu1 %1216  ;;  %s1246_s11 = scalar_lea.sflag [#allocation5], %s2196_s4  ;;  %s1931_s14 = sshra.s32 %s1265_s10, 4  ;;  %s1932_s14 = int_to_ptr.hbm [resolvable:$true] %s1931_s14 }
0x125e   : > { %v1219_v24 = vmul.f32 %v1217_v23, %v1197_v14  ;;  %s1933_s13 = scalar_lea.hbm %s1932_s14, 8  ;;  %s1937_s15 = scalar_lea.hbm %s2382_s6, 16 }
0x125f   : > { %p1934_p10 = scmp.ne.s32.totalorder %s1932_s14, %s1933_s13  ;;  %p1938_p3 = scmp.lt.s32.totalorder %s1932_s14, %s2382_s6 }
0x1260   : > { %v1233_v25 = vsel %vm1232_vm11, %v2315_v57, %v1219_v24  ;;  %p1939_p8 = scmp.lt.s32.totalorder %s1937_s15, %s1933_s13 }
0x1261   : > { %1235 = vrot.lane.b32.xlu2 %v1233_v25, %s2005_s26  ;;  %p1935_p11 = pnand %p1934_p10, %p2113_p0 }
0x1262   : > { %p1940_p13 = por %p1939_p8, %p1938_p3 }
0x1263   : > { %p1936_p12 = pneg %p1935_p11 }
0x1265   : > { %p1941_p9 = pnand %p1940_p13, %p1936_p12 }
0x12bb   : > { %v1236_v26 = vpop.permute.xlu2 %1235 }
0x12bc   : > { %1238 = vst.msk [vmem:[%s400_s16] sm:$0xff] %vm664_vm1, %v1236_v26 }
0x12bd   : > { %1944 = shalt.err (!%p1941_p9)
}
0x12be   : > { %1597 = dma.vmem_to_hbm [thread:$0]  (%p2113_p0), %s1263_s30, 128, %s1265_s10, %s1246_s11  }
0x12bf PF: > { %s2409_s4 = sld [smem:[#allocation20_spill]]  ;;  %p2411_p2 = scmp.ge.s32.totalorder %s1995_s27, 2 }
0x12c1   : > { %p1619_p4 = pnand %p2411_p2, %p2121_p5 }
0x12c3   : > { %p1620_p1 = pneg %p1619_p4 }
0x12c5   : > { %s1289_s24 = sand.u32 1, %s2409_s4  }
0x12c6   : > { %s1290_s22 = scalar_lea.sflag [#allocation5], %s1289_s24 }
0x12c7   : > { %1974 = dma.done.wait (%p1620_p1), %s1290_s22, 128  }
0x12c8   : > { %1976 = vsyncadd (%p1620_p1), %s1290_s22, 4294967168  ;;  %s1300_s12 = scalar_lea.sflag [#allocation14], %s1289_s24 }
0x12c9   : > { %1978 = dma.done.wait (%p1620_p1), %s1300_s12, 16  }
0x12ca   : > { %1980 = vsyncadd (%p1620_p1), %s1300_s12, 4294967280  ;;  %s2412_s27 = sld [smem:[#allocation22_spill]]  ;;  %s2415_s24 = smov %s1987_s25 }
0x12cb   : > { %s2413_s9 = sld [smem:[#allocation21_spill]] }
0x12cc   : > { %s2414_s26 = sld [smem:[#allocation23_spill]] }
0x12d0   : > { %p28_p0 = scmp.ge.s32.totalorder %s2412_s27, 4  }
0x12d1   : > { %s2416_s25 = smov %s2413_s9 }
0x12d2   :  { %30 = sbr.rel (!%p28_p0) target bundleno = 14 (0xe), region = 138 }
0x12d7   :  { %1305 = vsyncpa [#allocation4], 1 }
0x12d8   :  { %1307 = vsyncpa [#allocation4 + $0x1], 1 }
0x12d9   :  { %1308 = vsyncpa [#allocation7], 1 }
0x12da   :  { %1310 = vsyncpa [#allocation7 + $0x1], 1 }
0x12db   :  { %1311 = vsyncpa [#allocation10], 1 }
0x12dc   :  { %1312 = vsyncpa [#allocation5], 1 }
0x12dd   :  { %1314 = vsyncpa [#allocation5 + $0x1], 1 }
0x12de   :  { %1315 = vsyncpa [#allocation14], 1 }
0x12df   :  { %1317 = vsyncpa [#allocation14 + $0x1], 1 }

</bundles_post_ra>
